<compile_context>
chip_gen: v6e
topology: v6e:2x2x1
jax: 0.10.0
libtpu: 0.0.40
codegen_flags: <defaults>
</compile_context>

<pallas_src>
import jax
import jax.numpy as jnp
from jax import lax
from jax.experimental import pallas as pl
from jax.experimental.pallas import tpu as pltpu

_ROW_CHUNK = 128  # in-kernel M chunk: one MXU-friendly slab per 3-layer chain


def _round_up(x, m):
    return (x + m - 1) // m * m


def _num_tensorcores():
    """Best-effort TensorCores-per-device detection (v7x / v4 / v5p => 2)."""
    try:
        kind = jax.devices()[0].device_kind.lower()
    except Exception:
        return 1
    if "7" in kind or "v4" in kind or "v5p" in kind or "v5 p" in kind:
        return 2
    return 1


def _make_matrix_kernel(row_chunk, num_chunks):
    def kernel(x_ref, w1_ref, w2_ref, w3_ref, o_ref):
        # Weights are VMEM-resident (constant index_map); load once per tile.
        w1 = w1_ref[...]
        w2 = w2_ref[...]
        w3 = w3_ref[...]

        def chain(c, carry):
            # Full fused 3-layer chain on one row chunk; intermediates never
            # leave VMEM. Chunking gives the scheduler independent MXU work to
            # overlap with the EUP tanh and bounds live vregs at big tiles.
            r = c * row_chunk
            if not isinstance(c, int):
                r = pl.multiple_of(r, row_chunk)
            x = x_ref[pl.ds(r, row_chunk), :]
            h1 = jnp.tanh(jnp.dot(x, w1, preferred_element_type=jnp.float32))
            h2 = jnp.tanh(jnp.dot(h1.astype(w2.dtype), w2,
                                  preferred_element_type=jnp.float32))
            out = jnp.dot(h2.astype(w3.dtype), w3,
                          preferred_element_type=jnp.float32)
            o_ref[pl.ds(r, row_chunk), :] = out.astype(o_ref.dtype)
            return carry

        if num_chunks == 1:
            chain(0, 0)
        else:
            lax.fori_loop(0, num_chunks, chain, 0, unroll=True)

    return kernel


def matrix_forward(x, w1, w2, w3, *, tile_m=512, mxu_dtype=jnp.bfloat16,
                   num_cores=None):
    """Fused Matrix forward.

    x        : [B, n] activations.
    w1/w2/w3 : [n, n] PyTorch nn.Linear weights in (out, in) layout.
    Returns  : [B, n] (x.dtype) = (tanh(tanh(x W1^T) W2^T)) W3^T.
    """
    b, n = x.shape
    assert w1.shape == (n, n) and w2.shape == (n, n) and w3.shape == (n, n)
    out_dtype = x.dtype

    # bf16 MXU operands (accumulation is explicit f32 in-kernel); transpose the
    # loop-invariant weights ONCE to [in, out] so the kernel does plain x @ W.
    x_in = x.astype(mxu_dtype)
    w1_t = w1.T.astype(mxu_dtype)
    w2_t = w2.T.astype(mxu_dtype)
    w3_t = w3.T.astype(mxu_dtype)

    # ---- batch-tile selection (core-aware) ----------------------------------
    num_tc = num_cores if num_cores is not None else _num_tensorcores()
    tile_m = _round_up(max(int(tile_m), _ROW_CHUNK), _ROW_CHUNK)
    tm = min(tile_m, _round_up(pl.cdiv(b, num_tc), 8))   # >= num_tc tiles of work
    if tm >= _ROW_CHUNK:
        tm = _round_up(tm, _ROW_CHUNK)   # in-kernel chunk loop divides evenly
    row_chunk = min(_ROW_CHUNK, tm)
    num_chunks = tm // row_chunk
    grid = (pl.cdiv(b, tm),)             # partial last block is masked by Pallas

    # ---- explicit VMEM budget (v5e default scoped limit is only 16 MiB) -----
    in_b = jnp.dtype(mxu_dtype).itemsize
    out_b = jnp.dtype(out_dtype).itemsize
    vmem_est = (2 * tm * n * in_b            # double-buffered X tiles
                + 2 * tm * n * out_b         # double-buffered out tiles
                + 2 * 3 * n * n * in_b       # resident (double-buffered) weights
                + 8 * row_chunk * n * 4)     # f32 intermediates / headroom
    vmem_limit = int(min(max(2 * vmem_est, 16 * 1024 * 1024), 64 * 1024 * 1024))

    cost = pl.CostEstimate(
        flops=2 * 3 * b * n * n,
        transcendentals=2 * b * n,
        bytes_accessed=b * n * (in_b + out_b) + 3 * n * n * in_b,
    )

    kernel = _make_matrix_kernel(row_chunk, num_chunks)

    return pl.pallas_call(
        kernel,
        out_shape=jax.ShapeDtypeStruct((b, n), out_dtype),
        grid_spec=pltpu.PrefetchScalarGridSpec(
            num_scalar_prefetch=0,
            grid=grid,
            in_specs=[
                pl.BlockSpec((tm, n), lambda i: (i, 0)),   # X tile, pipelined
                pl.BlockSpec((n, n), lambda i: (0, 0)),    # W1^T resident
                pl.BlockSpec((n, n), lambda i: (0, 0)),    # W2^T resident
                pl.BlockSpec((n, n), lambda i: (0, 0)),    # W3^T resident
            ],
            out_specs=pl.BlockSpec((tm, n), lambda i: (i, 0)),
        ),
        compiler_params=pltpu.CompilerParams(
            dimension_semantics=("parallel",),              # megacore / v7x 2-TC
            vmem_limit_bytes=vmem_limit,
        ),
        cost_estimate=cost,
    )(x_in, w1_t, w2_t, w3_t)


def init_linear_weight(key, n, dtype=jnp.float32):
    # torch.nn.Linear default init: U(-1/sqrt(in), 1/sqrt(in)), shape [out, in].
    bound = 1.0 / (n ** 0.5)
    return jax.random.uniform(key, (n, n), dtype=dtype, minval=-bound, maxval=bound)


if __name__ == "__main__":
    n = 128      # lane-dense feature dim for the three square Linear layers
    batch = 600  # not a multiple of the tile -> exercises the masked partial block

    key = jax.random.PRNGKey(0)
    kx, k1, k2, k3 = jax.random.split(key, 4)

    x = jax.random.normal(kx, (batch, n), dtype=jnp.float32)
    w1 = init_linear_weight(k1, n)
    w2 = init_linear_weight(k2, n)
    w3 = init_linear_weight(k3, n)

    out = jax.block_until_ready(matrix_forward(x, w1, w2, w3))
    assert out.shape == (batch, n)

    # Reference with the SAME bf16-operand / f32-accumulate numerics as the kernel.
    xb = x.astype(jnp.bfloat16)
    h1 = jnp.tanh(jnp.dot(xb, w1.T.astype(jnp.bfloat16),
                          preferred_element_type=jnp.float32))
    h2 = jnp.tanh(jnp.dot(h1.astype(jnp.bfloat16), w2.T.astype(jnp.bfloat16),
                          preferred_element_type=jnp.float32))
    ref_bf16 = jnp.dot(h2.astype(jnp.bfloat16), w3.T.astype(jnp.bfloat16),
                       preferred_element_type=jnp.float32)
    assert jnp.allclose(out, ref_bf16, atol=5e-3, rtol=5e-3), \
        "mismatch vs bf16-path reference"

    # Full-f32 reference of the module semantics (loose bound: bf16 rounding only).
    ref_f32 = jnp.tanh(x @ w1.T)
    ref_f32 = jnp.tanh(ref_f32 @ w2.T)
    ref_f32 = ref_f32 @ w3.T
    assert jnp.allclose(out, ref_f32, atol=1e-1, rtol=1e-1), \
        "mismatch vs f32 reference"

    print("KERNEL_OK")
</pallas_src>

<mosaic_0001>
module attributes {stable_mosaic.version = 11 : i64} {
  func.func @kernel(%arg0: i32, %arg1: memref<512x128xbf16, #tpu.memory_space<vmem>>, %arg2: memref<128x128xbf16, #tpu.memory_space<vmem>>, %arg3: memref<128x128xbf16, #tpu.memory_space<vmem>>, %arg4: memref<128x128xbf16, #tpu.memory_space<vmem>>, %arg5: memref<512x128xf32, #tpu.memory_space<vmem>>) attributes {dimension_semantics = [#tpu.dimension_semantics<parallel>], iteration_bounds = array<i64: 2>, scalar_prefetch = 0 : i64, scratch_operands = 0 : i64, tpu.core_type = #tpu.core_type<tc>, window_params = [{transform_indices = @transform_0, window_bounds = array<i64: 512, 128>}, {pipeline_mode = #tpu.pipeline_mode<synchronous>, transform_indices = @transform_1, window_bounds = array<i64: 128, 128>}, {pipeline_mode = #tpu.pipeline_mode<synchronous>, transform_indices = @transform_2, window_bounds = array<i64: 128, 128>}, {pipeline_mode = #tpu.pipeline_mode<synchronous>, transform_indices = @transform_3, window_bounds = array<i64: 128, 128>}, {transform_indices = @transform_4, window_bounds = array<i64: 512, 128>}]} {
    %c0 = arith.constant 0 : index
    %c0_0 = arith.constant 0 : index
    %0 = vector.load %arg2[%c0, %c0_0] : memref<128x128xbf16, #tpu.memory_space<vmem>>, vector<128x128xbf16>
    %c0_1 = arith.constant 0 : index
    %c0_2 = arith.constant 0 : index
    %1 = vector.load %arg3[%c0_1, %c0_2] : memref<128x128xbf16, #tpu.memory_space<vmem>>, vector<128x128xbf16>
    %c0_3 = arith.constant 0 : index
    %c0_4 = arith.constant 0 : index
    %2 = vector.load %arg4[%c0_3, %c0_4] : memref<128x128xbf16, #tpu.memory_space<vmem>>, vector<128x128xbf16>
    %c0_i32 = arith.constant 0 : i32
    %c128_i32 = arith.constant 128 : i32
    %3 = arith.muli %c0_i32, %c128_i32 : i32
    %4 = tpu.assume_multiple %3, 128 : i32
    %5 = arith.index_cast %4 : i32 to index
    %c0_5 = arith.constant 0 : index
    %6 = vector.load %arg1[%5, %c0_5] : memref<512x128xbf16, #tpu.memory_space<vmem>>, vector<128x128xbf16>
    %cst = arith.constant dense<0.000000e+00> : vector<128x128xf32>
    %7 = tpu.matmul %6, %0, %cst {dimension_numbers = #tpu.dot_dimension_numbers<[1], [0], [0], [1], [0, 0, 1, 1], [], []>} : vector<128x128xbf16>, vector<128x128xbf16>, vector<128x128xf32> -> vector<128x128xf32>
    %8 = math.tanh %7 : vector<128x128xf32>
    %9 = arith.truncf %8 : vector<128x128xf32> to vector<128x128xbf16>
    %cst_6 = arith.constant dense<0.000000e+00> : vector<128x128xf32>
    %10 = tpu.matmul %9, %1, %cst_6 {dimension_numbers = #tpu.dot_dimension_numbers<[1], [0], [0], [1], [0, 0, 1, 1], [], []>} : vector<128x128xbf16>, vector<128x128xbf16>, vector<128x128xf32> -> vector<128x128xf32>
    %11 = math.tanh %10 : vector<128x128xf32>
    %12 = arith.truncf %11 : vector<128x128xf32> to vector<128x128xbf16>
    %cst_7 = arith.constant dense<0.000000e+00> : vector<128x128xf32>
    %13 = tpu.matmul %12, %2, %cst_7 {dimension_numbers = #tpu.dot_dimension_numbers<[1], [0], [0], [1], [0, 0, 1, 1], [], []>} : vector<128x128xbf16>, vector<128x128xbf16>, vector<128x128xf32> -> vector<128x128xf32>
    %14 = arith.index_cast %4 : i32 to index
    %c0_8 = arith.constant 0 : index
    %15 = vector.load %arg5[%14, %c0_8] : memref<512x128xf32, #tpu.memory_space<vmem>>, vector<128x128xf32>
    tpu.vector_store %arg5[%14, %c0_8], %13 {strides = array<i32>} : memref<512x128xf32, #tpu.memory_space<vmem>>, vector<128x128xf32>,
    %c1_i32 = arith.constant 1 : i32
    %c128_i32_9 = arith.constant 128 : i32
    %16 = arith.muli %c1_i32, %c128_i32_9 : i32
    %17 = tpu.assume_multiple %16, 128 : i32
    %18 = arith.index_cast %17 : i32 to index
    %c0_10 = arith.constant 0 : index
    %19 = vector.load %arg1[%18, %c0_10] : memref<512x128xbf16, #tpu.memory_space<vmem>>, vector<128x128xbf16>
    %cst_11 = arith.constant dense<0.000000e+00> : vector<128x128xf32>
    %20 = tpu.matmul %19, %0, %cst_11 {dimension_numbers = #tpu.dot_dimension_numbers<[1], [0], [0], [1], [0, 0, 1, 1], [], []>} : vector<128x128xbf16>, vector<128x128xbf16>, vector<128x128xf32> -> vector<128x128xf32>
    %21 = math.tanh %20 : vector<128x128xf32>
    %22 = arith.truncf %21 : vector<128x128xf32> to vector<128x128xbf16>
    %cst_12 = arith.constant dense<0.000000e+00> : vector<128x128xf32>
    %23 = tpu.matmul %22, %1, %cst_12 {dimension_numbers = #tpu.dot_dimension_numbers<[1], [0], [0], [1], [0, 0, 1, 1], [], []>} : vector<128x128xbf16>, vector<128x128xbf16>, vector<128x128xf32> -> vector<128x128xf32>
    %24 = math.tanh %23 : vector<128x128xf32>
    %25 = arith.truncf %24 : vector<128x128xf32> to vector<128x128xbf16>
    %cst_13 = arith.constant dense<0.000000e+00> : vector<128x128xf32>
    %26 = tpu.matmul %25, %2, %cst_13 {dimension_numbers = #tpu.dot_dimension_numbers<[1], [0], [0], [1], [0, 0, 1, 1], [], []>} : vector<128x128xbf16>, vector<128x128xbf16>, vector<128x128xf32> -> vector<128x128xf32>
    %27 = arith.index_cast %17 : i32 to index
    %c0_14 = arith.constant 0 : index
    %28 = vector.load %arg5[%27, %c0_14] : memref<512x128xf32, #tpu.memory_space<vmem>>, vector<128x128xf32>
    tpu.vector_store %arg5[%27, %c0_14], %26 {strides = array<i32>} : memref<512x128xf32, #tpu.memory_space<vmem>>, vector<128x128xf32>,
    %c2_i32 = arith.constant 2 : i32
    %c128_i32_15 = arith.constant 128 : i32
    %29 = arith.muli %c2_i32, %c128_i32_15 : i32
    %30 = tpu.assume_multiple %29, 128 : i32
    %31 = arith.index_cast %30 : i32 to index
    %c0_16 = arith.constant 0 : index
    %32 = vector.load %arg1[%31, %c0_16] : memref<512x128xbf16, #tpu.memory_space<vmem>>, vector<128x128xbf16>
    %cst_17 = arith.constant dense<0.000000e+00> : vector<128x128xf32>
    %33 = tpu.matmul %32, %0, %cst_17 {dimension_numbers = #tpu.dot_dimension_numbers<[1], [0], [0], [1], [0, 0, 1, 1], [], []>} : vector<128x128xbf16>, vector<128x128xbf16>, vector<128x128xf32> -> vector<128x128xf32>
    %34 = math.tanh %33 : vector<128x128xf32>
    %35 = arith.truncf %34 : vector<128x128xf32> to vector<128x128xbf16>
    %cst_18 = arith.constant dense<0.000000e+00> : vector<128x128xf32>
    %36 = tpu.matmul %35, %1, %cst_18 {dimension_numbers = #tpu.dot_dimension_numbers<[1], [0], [0], [1], [0, 0, 1, 1], [], []>} : vector<128x128xbf16>, vector<128x128xbf16>, vector<128x128xf32> -> vector<128x128xf32>
    %37 = math.tanh %36 : vector<128x128xf32>
    %38 = arith.truncf %37 : vector<128x128xf32> to vector<128x128xbf16>
    %cst_19 = arith.constant dense<0.000000e+00> : vector<128x128xf32>
    %39 = tpu.matmul %38, %2, %cst_19 {dimension_numbers = #tpu.dot_dimension_numbers<[1], [0], [0], [1], [0, 0, 1, 1], [], []>} : vector<128x128xbf16>, vector<128x128xbf16>, vector<128x128xf32> -> vector<128x128xf32>
    %40 = arith.index_cast %30 : i32 to index
    %c0_20 = arith.constant 0 : index
    %41 = vector.load %arg5[%40, %c0_20] : memref<512x128xf32, #tpu.memory_space<vmem>>, vector<128x128xf32>
    tpu.vector_store %arg5[%40, %c0_20], %39 {strides = array<i32>} : memref<512x128xf32, #tpu.memory_space<vmem>>, vector<128x128xf32>,
    %c3_i32 = arith.constant 3 : i32
    %c128_i32_21 = arith.constant 128 : i32
    %42 = arith.muli %c3_i32, %c128_i32_21 : i32
    %43 = tpu.assume_multiple %42, 128 : i32
    %44 = arith.index_cast %43 : i32 to index
    %c0_22 = arith.constant 0 : index
    %45 = vector.load %arg1[%44, %c0_22] : memref<512x128xbf16, #tpu.memory_space<vmem>>, vector<128x128xbf16>
    %cst_23 = arith.constant dense<0.000000e+00> : vector<128x128xf32>
    %46 = tpu.matmul %45, %0, %cst_23 {dimension_numbers = #tpu.dot_dimension_numbers<[1], [0], [0], [1], [0, 0, 1, 1], [], []>} : vector<128x128xbf16>, vector<128x128xbf16>, vector<128x128xf32> -> vector<128x128xf32>
    %47 = math.tanh %46 : vector<128x128xf32>
    %48 = arith.truncf %47 : vector<128x128xf32> to vector<128x128xbf16>
    %cst_24 = arith.constant dense<0.000000e+00> : vector<128x128xf32>
    %49 = tpu.matmul %48, %1, %cst_24 {dimension_numbers = #tpu.dot_dimension_numbers<[1], [0], [0], [1], [0, 0, 1, 1], [], []>} : vector<128x128xbf16>, vector<128x128xbf16>, vector<128x128xf32> -> vector<128x128xf32>
    %50 = math.tanh %49 : vector<128x128xf32>
    %51 = arith.truncf %50 : vector<128x128xf32> to vector<128x128xbf16>
    %cst_25 = arith.constant dense<0.000000e+00> : vector<128x128xf32>
    %52 = tpu.matmul %51, %2, %cst_25 {dimension_numbers = #tpu.dot_dimension_numbers<[1], [0], [0], [1], [0, 0, 1, 1], [], []>} : vector<128x128xbf16>, vector<128x128xbf16>, vector<128x128xf32> -> vector<128x128xf32>
    %53 = arith.index_cast %43 : i32 to index
    %c0_26 = arith.constant 0 : index
    %54 = vector.load %arg5[%53, %c0_26] : memref<512x128xf32, #tpu.memory_space<vmem>>, vector<128x128xf32>
    tpu.vector_store %arg5[%53, %c0_26], %52 {strides = array<i32>} : memref<512x128xf32, #tpu.memory_space<vmem>>, vector<128x128xf32>,
    %c4_i32 = arith.constant 4 : i32
    return
  }
  func.func @transform_0(%arg0: i32) -> (i32, i32) {
    %c0_i32 = arith.constant 0 : i32
    %c0_i32_0 = arith.constant 0 : i32
    return %arg0, %c0_i32 : i32, i32
  }
  func.func @transform_1(%arg0: i32) -> (i32, i32) {
    %c0_i32 = arith.constant 0 : i32
    %c0_i32_0 = arith.constant 0 : i32
    %c0_i32_1 = arith.constant 0 : i32
    return %c0_i32, %c0_i32_0 : i32, i32
  }
  func.func @transform_2(%arg0: i32) -> (i32, i32) {
    %c0_i32 = arith.constant 0 : i32
    %c0_i32_0 = arith.constant 0 : i32
    %c0_i32_1 = arith.constant 0 : i32
    return %c0_i32, %c0_i32_0 : i32, i32
  }
  func.func @transform_3(%arg0: i32) -> (i32, i32) {
    %c0_i32 = arith.constant 0 : i32
    %c0_i32_0 = arith.constant 0 : i32
    %c0_i32_1 = arith.constant 0 : i32
    return %c0_i32, %c0_i32_0 : i32, i32
  }
  func.func @transform_4(%arg0: i32) -> (i32, i32) {
    %c0_i32 = arith.constant 0 : i32
    %c0_i32_0 = arith.constant 0 : i32
    return %arg0, %c0_i32 : i32, i32
  }
}

</mosaic_0001>

<bundles_post_ra>
// kernel: tpu_custom_call.1
= control target key start
LH: loop header
LB: loop body
LE: loop exit
PB: predicated region body
PF: predicated region fallthrough
CT: control target
= control target key end

     0   :  { %9 = vsyncpa [#allocation3], 0  ;;  %s4192_s0 = inlined_call_operand.hbm [shape: bf16[600,128], index: 0, kind: input, shape index: {}]   ;;  %s4193_s1 = inlined_call_operand.hbm [shape: bf16[128,128], index: 1, kind: input, shape index: {}]   ;;  %s4194_s2 = inlined_call_operand.hbm [shape: bf16[128,128], index: 2, kind: input, shape index: {}]   ;;  %s4195_s3 = inlined_call_operand.hbm [shape: bf16[128,128], index: 3, kind: input, shape index: {}]   ;;  %s4196_s4 = inlined_call_operand.hbm [shape: f32[600,128], index: 4, kind: output, shape index: {}]  }
   0x1   :  { %11 = vsyncpa [#allocation3 + $0x1], 0 }
   0x2   :  { %12 = vsyncpa [#allocation6], 0 }
   0x3   :  { %13 = vsyncpa [#allocation9], 0 }
   0x4   :  { %14 = vsyncpa [#allocation4], 0 }
   0x5   :  { %16 = vsyncpa [#allocation4 + $0x1], 0  ;;  %s3652_s15 = smov 0   ;;  %s3654_s16 = smov 0  }
   0x6   :  { %s3656_s17 = smov 0   ;;  %s3658_s18 = smov 0  }
   0x7 LB: > { %s3673_s19 = sadd.s32 4294967295, %s3614_s18   ;;  %s2273_s20 = sadd.s32 4294967294, %s3614_s18   ;;  %s3614_s18 = sphi %s3658_s18, %s4215_s18   ;;  %s3610_s17 = sphi %s3656_s17, %s4214_s17   ;;  %s3606_s16 = sphi %s3654_s16, %s4213_s16   ;;  %s3602_s15 = sphi %s3652_s15, %s4212_s15  }
   0x8   : > { %s3677_s21 = sadd.s32 1, %s3614_s18   ;;  %s29_s22 = sadd.s32 1, %s3610_s17 }
   0x9   : > { %s26_s23 = ssub.s32 %s3614_s18, %s3677_s21  ;;  %p36_p0 = scmp.ne.s32.totalorder %s3610_s17, %s3606_s16 }
   0xa   : > { %p27_p1 = scmp.eq.s32.totalorder %s26_s23, 0  ;;  %p37_p2 = scmp.eq.s32.totalorder %s3614_s18, 0 }
   0xb   : > { %p42_p3 = scmp.ne.s32.totalorder %s3606_s16, %s3602_s15  ;;  %p4197_p4 = scmp.eq.s32.totalorder %s3673_s19, 0 }
   0xc   : > { %s3689_s24 = scalar_select %p27_p1, %s3610_s17, %s29_s22  }
   0xd   : > { %p3691_p5 = por %p37_p2, %p36_p0  ;;  %p3697_p6 = por %p4197_p4, %p42_p3 }
   0xe   : > { %p129_p7 = scmp.eq.s32.totalorder %s3673_s19, 1  ;;  %p135_p8 = scmp.eq.s32.totalorder %s2273_s20, 1 }
   0xf   : > { %s4200_s26 = scalar_select %p3697_p6, 1, 0 }
  0x10   : > { %p2274_p9 = scmp.ge.s32.totalorder %s3614_s18, 1  ;;  %p142_p10 = scmp.lt.s32.totalorder %s3614_s18, 3 }
  0x11   : > { %p3704_p11 = por %p129_p7, %p36_p0  ;;  %p3708_p12 = por %p135_p8, %p42_p3 }
  0x12   : > { %p3712_p13 = pnand %p2274_p9, %p142_p10  ;;  %s3616_s30 = smov [#allocation5]  }
  0x13   : > { %s4201_s27 = scalar_select %p3704_p11, 1, 0 }
  0x14   : > { %s4202_s28 = scalar_select %p3708_p12, 1, 0 }
  0x15   : > { %p3045_p1 = pneg %p3712_p13  ;;  %s154_s5 = sshll.u32 %s3616_s30, 4  ;;  %s155_s5 = int_to_ptr.vmem [resolvable:$true] %s154_s5 }
  0x16   : > { %s3617_s7 = smov [#allocation7]   ;;  %s3449_s9 = scalar_lea.vmem %s155_s5, 1024 }
  0x17   : > { %p3720_p2 = pnand %p3045_p1, %p4197_p4  ;;  %s167_s8 = sshll.u32 %s3617_s7, 4  ;;  %s168_s8 = int_to_ptr.vmem [resolvable:$true] %s167_s8 }
  0x18   : > { %p3450_p3 = scmp.ne.s32.totalorder %s155_s5, %s3449_s9  ;;  %p3457_p9 = scmp.lt.s32.totalorder %s155_s5, %s155_s5 }
  0x19   : > { %p3440_p0 = pneg %p3720_p2  ;;  %p3458_p10 = scmp.lt.s32.totalorder %s3449_s9, %s3449_s9 }
  0x1b   : > { %p3452_p7 = pnand %p3450_p3, %p3440_p0  ;;  %p3459_p12 = por %p3458_p10, %p3457_p9 }
  0x1d   : > { %p3453_p8 = pneg %p3452_p7 }
  0x1f   : > { %p3460_p1 = pnand %p3459_p12, %p3453_p8 }
  0x21   : > { %3463 = shalt.err (!%p3460_p1)
}
  0x22   : > { %s3618_s10 = smov 64   ;;  %s3619_s11 = smov 4  }
  0x23   : > { %3048 = dma.hbm_to_vmem [thread:$0]  (!%p3720_p2), %s4193_s1, 1024, %s155_s5, [#allocation6], %s3618_s10, %s3618_s10, %s3619_s11  }
  0x24   : > { %s3475_s14 = scalar_lea.vmem %s168_s8, 1024  ;;  %p3483_p11 = scmp.lt.s32.totalorder %s168_s8, %s168_s8 }
  0x25   : > { %p3476_p4 = scmp.ne.s32.totalorder %s168_s8, %s3475_s14  ;;  %p3484_p6 = scmp.lt.s32.totalorder %s3475_s14, %s3475_s14 }
  0x27   : > { %p3478_p3 = pnand %p3476_p4, %p3440_p0  ;;  %p3485_p9 = por %p3484_p6, %p3483_p11 }
  0x29   : > { %p3479_p7 = pneg %p3478_p3 }
  0x2b   : > { %p3486_p12 = pnand %p3485_p9, %p3479_p7 }
  0x2d   : > { %3489 = shalt.err (!%p3486_p12)
}
  0x2e   : > { %3051 = dma.hbm_to_vmem [thread:$0]  (!%p3720_p2), %s4194_s2, 1024, %s168_s8, [#allocation6], %s3618_s10, %s3618_s10, %s3619_s11  }
  0x2f   : > { %s3620_s23 = smov [#allocation8]  }
  0x30   : > { %s180_s30 = sshll.u32 %s3620_s23, 4  ;;  %s181_s30 = int_to_ptr.vmem [resolvable:$true] %s180_s30 }
  0x31   : > { %s3501_s5 = scalar_lea.vmem %s181_s30, 1024  ;;  %p3509_p1 = scmp.lt.s32.totalorder %s181_s30, %s181_s30 }
  0x32   : > { %p3502_p8 = scmp.ne.s32.totalorder %s181_s30, %s3501_s5  ;;  %p3510_p6 = scmp.lt.s32.totalorder %s3501_s5, %s3501_s5 }
  0x34   : > { %p3504_p4 = pnand %p3502_p8, %p3440_p0  ;;  %p3511_p11 = por %p3510_p6, %p3509_p1 }
  0x36   : > { %p3505_p10 = pneg %p3504_p4 }
  0x38   : > { %p3512_p3 = pnand %p3511_p11, %p3505_p10 }
  0x3a   : > { %3515 = shalt.err (!%p3512_p3)
}
  0x3b   : > { %3054 = dma.hbm_to_vmem [thread:$0]  (!%p3720_p2), %s4195_s3, 1024, %s181_s30, [#allocation9], %s3618_s10, %s3618_s10, %s3619_s11  }
  0x3c   : > { %p2278_p7 = scmp.ge.s32.totalorder %s3614_s18, 2 }
  0x3e   : > { %190 = sbr.rel (%p2278_p7) target bundleno = 99 (0x63), region = 28 }
  0x43   : > { %193 = sbr.rel (!%p3691_p5) target bundleno = 99 (0x63), region = 32  ;;  %s194_s8 = sand.u32 (%p3691_p5), 1, %s3610_s17  }
  0x44   : > { %s2280_s12 = sshll.u32 (%p3691_p5), %s3614_s18, 6  ;;  %s2279_s13 = sshll.u32 (%p3691_p5), %s194_s8, 8 }
  0x45   : > { %s200_s14 = ssub.s32 (%p3691_p5), 75, %s2280_s12  ;;  %s3760_s11 = scalar_lea.sflag (%p3691_p5), [#allocation3], %s194_s8 }
  0x46   : > { %p201_p0 = scmp.lt.s32.totalorder (%p3691_p5), %s200_s14, 64  ;;  %s198_s20 = scalar_lea.vmem (%p3691_p5), [#allocation2], %s2279_s13 }
  0x48   : > { %s4217_s14 = smov (!%p201_p0, %s200_s14), 64 }
  0x49   : > { %s3757_s6 = sshll.u32 %s4217_s14, 6 }
  0x4a   : > { %s205_s10 = ssub.s32 4096, %s3757_s6 }
  0x4b   : > { %206 = vsyncadd %s3760_s11, %s205_s10  ;;  %p2282_p5 = scmp.ne.s32.totalorder %s3757_s6, 0  ;;  %s2453_s25 = sshll.u32 %s3614_s18, 12 }
  0x4c   : > { %s3768_s30 = scalar_lea.hbm %s4192_s0, %s2453_s25  ;;  %s211_s5 = sshll.u32 %s198_s20, 4  ;;  %s3770_s5 = int_to_ptr.vmem [resolvable:$true] %s211_s5 }
  0x4d   : > { %s3516_s7 = scalar_lea.hbm %s3768_s30, %s3757_s6  ;;  %s3520_s12 = scalar_lea.hbm %s4192_s0, 4800 }
  0x4e   : > { %p3517_p2 = scmp.ne.s32.totalorder %s3768_s30, %s3516_s7  ;;  %p3521_p8 = scmp.lt.s32.totalorder %s3768_s30, %s4192_s0 }
  0x4f   : > { %p3522_p4 = scmp.lt.s32.totalorder %s3520_s12, %s3516_s7 }
  0x50   : > { %p3518_p9 = pnand %p3517_p2, %p2282_p5 }
  0x51   : > { %p3523_p10 = por %p3522_p4, %p3521_p8 }
  0x52   : > { %p3519_p12 = pneg %p3518_p9 }
  0x54   : > { %p3524_p1 = pnand %p3523_p10, %p3519_p12 }
  0x56   : > { %3527 = shalt.err (!%p3524_p1)
}
  0x57   : > { %s3528_s10 = scalar_lea.vmem %s3770_s5, %s3757_s6  ;;  %s3621_s20 = smov [#allocation2]  }
  0x58   : > { %p3529_p6 = scmp.ne.s32.totalorder %s3770_s5, %s3528_s10  ;;  %s3532_s25 = sshll.u32 %s3621_s20, 4  ;;  %s3533_s25 = int_to_ptr.vmem [resolvable:$false] %s3532_s25 }
  0x59   : > { %s3534_s22 = scalar_lea.vmem %s3533_s25, 8192  ;;  %p3535_p0 = scmp.lt.s32.totalorder %s3770_s5, %s3533_s25 }
  0x5a   : > { %p3530_p11 = pnand %p3529_p6, %p2282_p5  ;;  %p3536_p2 = scmp.lt.s32.totalorder %s3534_s22, %s3528_s10 }
  0x5c   : > { %p3531_p3 = pneg %p3530_p11  ;;  %p3537_p9 = por %p3536_p2, %p3535_p0 }
  0x5e   : > { %p3538_p8 = pnand %p3537_p9, %p3531_p3 }
  0x60   : > { %3541 = shalt.err (!%p3538_p8)
}
  0x61   : > { %s3622_s23 = smov 64   ;;  %s3623_s7 = smov 4  }
  0x62   : > { %217 = dma.hbm_to_vmem [thread:$0]  (%p2282_p5), %s3768_s30, %s3757_s6, %s3770_s5, %s3760_s11, %s3622_s23, %s3622_s23, %s3623_s7  }
  0x63 PF: > { %223 = sbr.rel (%p3712_p13) target bundleno = 1571 (0x623), region = 36  ;;  %s3799_s9 = sand.u32 (!%p3712_p13), 1, %s3606_s16  }
  0x64   : > { %s2287_s8 = sshll.u32 (!%p3712_p13), %s3799_s9, 8  ;;  %s226_s12 = scalar_lea.sflag (!%p3712_p13), [#allocation3], %s3799_s9 }
  0x65   : > { %s3803_s13 = scalar_lea.vmem (!%p3712_p13), [#allocation2], %s2287_s8  ;;  %p4205_p12 = scmp.ne.s32.totalorder (!%p3712_p13), %s4200_s26, 0 }
  0x68   : > { %3585 = dma.done.wait (%p4205_p12), %s226_s12, 4096  }
  0x69   : > { %3587 = vsyncadd (%p4205_p12), %s226_s12, 4294963200  ;;  %p4206_p5 = scmp.eq.s32.totalorder %s3673_s19, 0 }
  0x6b   : > { %3589 = dma.done.wait (%p4206_p5), [#allocation6], 2048   ;;  %p4207_p13 = pmov %p4206_p5 }
  0x6c   : > { %p4208_p4 = pmov %p4206_p5 }
  0x6d   : > { %3591 = vsyncadd (%p4207_p13), [#allocation6], 4294965248 }
  0x6e   : > { %3593 = dma.done.wait (%p4208_p4), [#allocation9], 1024   ;;  %p4209_p10 = pmov %p4208_p4 }
  0x6f   : > { %v3817_v0 = vld [vmem:[#allocation5 + $0x38] sm:$0xff]   ;;  %v3819_v1 = vld [vmem:[#allocation5 + $0x30] sm:$0xff]   ;;  %v3824_v2 = vld [vmem:[#allocation5 + $0x28] sm:$0xff]   ;;  %s2291_s26 = sshll.u32 %s3799_s9, 9  ;;  %s2152_s6 = scalar_lea.sflag [#allocation4], %s3799_s9 }
  0x70   : > { %3595 = vsyncadd (%p4209_p10), [#allocation9], 4294966272  ;;  %2647 = vmatprep.subr.bf16.mxu0 %v3817_v0  ;;  %v3827_v3 = vld [vmem:[#allocation5 + $0x20] sm:$0xff]   ;;  %v3833_v5 = vld [vmem:[#allocation5 + $0x18] sm:$0xff]   ;;  %s4020_s29 = scalar_lea.vmem [#allocation10], %s2291_s26  ;;  %p4210_p1 = scmp.ne.s32.totalorder %s4201_s27, 0 }
  0x71   : > { %2648 = vmatpush3.bf16.msra.mxu0 %v3817_v0  ;;  %v3115_v4 = vld [vmem:[%s3803_s13] sm:$0xff]   ;;  %v3836_v6 = vld [vmem:[#allocation5 + $0x10] sm:$0xff]   ;;  %v3839_v7 = vld [vmem:[#allocation7 + $0x38] sm:$0xff]   ;;  %s2445_s11 = sshll.u32 (%p4210_p1), %s3673_s19, 6 }
  0x72   : > { %2649 = vmatprep.subr.bf16.mxu0 %v3819_v1  ;;  %2663 = vmatprep.mubr.bf16.mxu0 %v3115_v4  ;;  %v3841_v8 = vld [vmem:[#allocation7 + $0x30] sm:$0xff]   ;;  %v3843_v9 = vld [vmem:[#allocation5 + $0x8] sm:$0xff]   ;;  %v3852_v11 = vld [vmem:[#allocation5] sm:$0xff]   ;;  %s2160_s30 = ssub.s32 (%p4210_p1), 75, %s2445_s11 }
  0x73   : > { %2679 = vmatprep.subr.bf16.mxu1 %v3839_v7  ;;  %v3846_v10 = vld [vmem:[#allocation7 + $0x28] sm:$0xff]   ;;  %v3117_v13 = vld [vmem:[%s3803_s13 + $0x10] sm:$0xff]   ;;  %v3118_v14 = vld [vmem:[%s3803_s13 + $0x18] sm:$0xff]   ;;  %p2161_p6 = scmp.lt.s32.totalorder (%p4210_p1), %s2160_s30, 64 }
  0x74   : > { %2680 = vmatpush3.bf16.msra.mxu1 %v3839_v7  ;;  %v3116_v12 = vld [vmem:[%s3803_s13 + $0x8] sm:$0xff]   ;;  %v3119_v15 = vld [vmem:[%s3803_s13 + $0x20] sm:$0xff]   ;;  %v3121_v17 = vld [vmem:[%s3803_s13 + $0x30] sm:$0xff]  }
  0x75   : > { %2650 = vmatpush3.bf16.msra.mxu0 %v3819_v1  ;;  %2681 = vmatprep.subr.bf16.mxu1 %v3841_v8  ;;  %v3120_v16 = vld [vmem:[%s3803_s13 + $0x28] sm:$0xff]   ;;  %v3122_v18 = vld [vmem:[%s3803_s13 + $0x38] sm:$0xff]   ;;  %v3869_v19 = vld [vmem:[#allocation7 + $0x20] sm:$0xff]  }
  0x76   : > { %2651 = vmatprep.subr.bf16.mxu0 %v3824_v2  ;;  %v3873_v20 = vld [vmem:[#allocation7 + $0x18] sm:$0xff]   ;;  %v3877_v21 = vld [vmem:[#allocation7 + $0x10] sm:$0xff]   ;;  %v3881_v22 = vld [vmem:[#allocation7 + $0x8] sm:$0xff]  }
  0x77   : > { %v3885_v23 = vld [vmem:[#allocation7] sm:$0xff]   ;;  %v3890_v24 = vld [vmem:[#allocation8 + $0x38] sm:$0xff]   ;;  %v3892_v25 = vld [vmem:[#allocation8 + $0x30] sm:$0xff]  }
  0x78   : > { %2682 = vmatpush3.bf16.msra.mxu1 %v3841_v8  ;;  %v3897_v26 = vld [vmem:[#allocation8 + $0x28] sm:$0xff]  }
  0x79   : > { %2652 = vmatpush3.bf16.msra.mxu0 %v3824_v2  ;;  %2683 = vmatprep.subr.bf16.mxu1 %v3846_v10 }
  0x7a   : > { %2653 = vmatprep.subr.bf16.mxu0 %v3827_v3 }
  0x7c   : > { %2684 = vmatpush3.bf16.msra.mxu1 %v3846_v10 }
  0x7d   : > { %2654 = vmatpush3.bf16.msra.mxu0 %v3827_v3  ;;  %2685 = vmatprep.subr.bf16.mxu1 %v3869_v19 }
  0x7e   : > { %2655 = vmatprep.subr.bf16.mxu0 %v3833_v5 }
  0x80   : > { %2686 = vmatpush3.bf16.msra.mxu1 %v3869_v19 }
  0x81   : > { %2656 = vmatpush3.bf16.msra.mxu0 %v3833_v5  ;;  %2687 = vmatprep.subr.bf16.mxu1 %v3873_v20 }
  0x82   : > { %2657 = vmatprep.subr.bf16.mxu0 %v3836_v6 }
  0x84   : > { %2688 = vmatpush3.bf16.msra.mxu1 %v3873_v20 }
  0x85   : > { %2658 = vmatpush3.bf16.msra.mxu0 %v3836_v6  ;;  %2689 = vmatprep.subr.bf16.mxu1 %v3877_v21 }
  0x86   : > { %2659 = vmatprep.subr.bf16.mxu0 %v3843_v9 }
  0x88   : > { %2690 = vmatpush3.bf16.msra.mxu1 %v3877_v21 }
  0x89   : > { %2660 = vmatpush3.bf16.msra.mxu0 %v3843_v9  ;;  %2691 = vmatprep.subr.bf16.mxu1 %v3881_v22 }
  0x8a   : > { %2661 = vmatprep.subr.bf16.mxu0 %v3852_v11 }
  0x8c   : > { %2692 = vmatpush3.bf16.msra.mxu1 %v3881_v22 }
  0x8d   : > { %2662 = vmatpush3.bf16.msra.mxu0 %v3852_v11  ;;  %2693 = vmatprep.subr.bf16.mxu1 %v3885_v23 }
  0x8e   : > { %2711 = vmatprep.subr.bf16.mxu0 %v3890_v24 }
  0x90   : > { %2664 = vmatmul.mubr.bf16.vlgmr.msra.gmra.mxu0 %v3116_v12  ;;  %2694 = vmatpush3.bf16.msra.mxu1 %v3885_v23 }
  0x91   : > { %2667 = vmatprep.mubr.bf16.mxu0 %v3117_v13  ;;  %2743 = vmatprep.subr.bf16.mxu1 %v3817_v0  ;;  %v3131_v13 = vld [vmem:[%s3803_s13 + $0x40] sm:$0xff]  }
  0x92   : > { %2712 = vmatpush3.bf16.msra.mxu0 %v3890_v24 }
  0x93   : > { %2713 = vmatprep.subr.bf16.mxu0 %v3892_v25 }
  0x96   : > { %2714 = vmatpush3.bf16.msra.mxu0 %v3892_v25 }
  0x97   : > { %2715 = vmatprep.subr.bf16.mxu0 %v3897_v26 }
  0x98   : > { %2668 = vmatmul.mubr.bf16.gmra.mxu0 %v3118_v14 }
  0x99   : > { %2671 = vmatprep.mubr.bf16.mxu0 %v3119_v15  ;;  %v3132_v15 = vld [vmem:[%s3803_s13 + $0x48] sm:$0xff]  }
  0x9a   : > { %2716 = vmatpush3.bf16.msra.mxu0 %v3897_v26 }
  0xa0   : > { %2672 = vmatmul.mubr.bf16.gmra.mxu0 %v3120_v16  ;;  %v3133_v16 = vld [vmem:[%s3803_s13 + $0x50] sm:$0xff]  }
  0xa1   : > { %2675 = vmatprep.mubr.bf16.mxu0 %v3121_v17  ;;  %v3134_v17 = vld [vmem:[%s3803_s13 + $0x58] sm:$0xff]  }
  0xa8   : > { %2676 = vmatmul.mubr.bf16.gmra.mxu0 %v3122_v18  ;;  %v3135_v18 = vld [vmem:[%s3803_s13 + $0x60] sm:$0xff]  }
 0x150   : > { %v2665_v27 = vpop.f32.mrf.mxu0 }
 0x152   : > { %v471_v28 = vpop.f32.mrf.mxu0 }
 0x153   : > { %3163 = vtanh.f32 %v471_v28  ;;  %v3137_v28 = vld [vmem:[%s3803_s13 + $0x70] sm:$0xff]  }
 0x154   : > { %v2666_v29 = vpop.f32.mrf.mxu0 }
 0x155   : > { %3165 = vtanh.f32 %v2666_v29  ;;  %v3138_v29 = vld [vmem:[%s3803_s13 + $0x78] sm:$0xff]  }
 0x156   : > { %v474_v30 = vpop.f32.mrf.mxu0 }
 0x157   : > { %3167 = vtanh.f32 %v474_v30  ;;  %v3931_v30 = vld [vmem:[#allocation8 + $0x20] sm:$0xff]  }
 0x158   : > { %3169 = vtanh.f32 %v2665_v27  ;;  %v2669_v31 = vpop.f32.mrf.mxu0  ;;  %v3136_v27 = vld [vmem:[%s3803_s13 + $0x68] sm:$0xff]   ;;  %2717 = vmatprep.subr.bf16.mxu0 %v3931_v30 }
 0x159   : > { %2718 = vmatpush3.bf16.msra.mxu0 %v3931_v30 }
 0x15a   : > { %v487_v32 = vpop.f32.mrf.mxu0 }
 0x15b   : > { %3171 = vtanh.f32 %v487_v32  ;;  %v3943_v32 = vld [vmem:[#allocation8 + $0x10] sm:$0xff]  }
 0x15c   : > { %v2670_v33 = vpop.f32.mrf.mxu0 }
 0x15d   : > { %3173 = vtanh.f32 %v2670_v33  ;;  %v3949_v33 = vld [vmem:[#allocation8 + $0x8] sm:$0xff]  }
 0x15e   : > { %v490_v34 = vpop.f32.mrf.mxu0 }
 0x15f   : > { %3175 = vtanh.f32 %v490_v34  ;;  %v3955_v34 = vld [vmem:[#allocation8] sm:$0xff]  }
 0x160   : > { %3177 = vtanh.f32 %v2669_v31  ;;  %v2673_v35 = vpop.f32.mrf.mxu0  ;;  %v3164_v36 = vpop.eup %3163  ;;  %v3937_v31 = vld [vmem:[#allocation8 + $0x18] sm:$0xff]  }
 0x161   : > { %2719 = vmatprep.subr.bf16.mxu0 %v3937_v31 }
 0x162   : > { %v503_v37 = vpop.f32.mrf.mxu0  ;;  %v3166_v38 = vpop.eup %3165  ;;  %2720 = vmatpush3.bf16.msra.mxu0 %v3937_v31 }
 0x163   : > { %3179 = vtanh.f32 %v503_v37  ;;  %2721 = vmatprep.subr.bf16.mxu0 %v3943_v32 }
 0x164   : > { %v3168_v39 = vpop.eup %3167  ;;  %v2674_v40 = vpop.f32.mrf.mxu0 }
 0x165   : > { %v3170_v41 = vpop.eup %3169  ;;  %v550_v42 = vpack.c.bf16 %v3168_v39, %v3164_v36  ;;  %3181 = vtanh.f32 %v2674_v40 }
 0x166   : > { %v506_v43 = vpop.f32.mrf.mxu0  ;;  %v551_v44 = vpack.c.bf16 %v3166_v38, %v3170_v41  ;;  %2722 = vmatpush3.bf16.msra.mxu0 %v3943_v32 }
 0x167   : > { %3183 = vtanh.f32 %v506_v43  ;;  %2695 = vmatprep.mubr.bf16.mxu1 %v550_v42  ;;  %2723 = vmatprep.subr.bf16.mxu0 %v3949_v33 }
 0x168   : > { %3185 = vtanh.f32 %v2673_v35  ;;  %v2677_v45 = vpop.f32.mrf.mxu0  ;;  %2696 = vmatmul.mubr.bf16.vlgmr.msra.gmra.mxu1 %v551_v44  ;;  %v3172_v46 = vpop.eup %3171 }
 0x169   : > { %2744 = vmatpush3.bf16.msra.mxu1 %v3817_v0 }
 0x16a   : > { %v519_v47 = vpop.f32.mrf.mxu0  ;;  %2745 = vmatprep.subr.bf16.mxu1 %v3819_v1  ;;  %v3174_v48 = vpop.eup %3173  ;;  %2724 = vmatpush3.bf16.msra.mxu0 %v3949_v33 }
 0x16b   : > { %3187 = vtanh.f32 %v519_v47  ;;  %2725 = vmatprep.subr.bf16.mxu0 %v3955_v34 }
 0x16c   : > { %v3176_v49 = vpop.eup %3175  ;;  %v2678_v50 = vpop.f32.mrf.mxu0 }
 0x16d   : > { %v3178_v51 = vpop.eup %3177  ;;  %2746 = vmatpush3.bf16.msra.mxu1 %v3819_v1  ;;  %v552_v52 = vpack.c.bf16 %v3176_v49, %v3172_v46  ;;  %3189 = vtanh.f32 %v2678_v50 }
 0x16e   : > { %v522_v53 = vpop.f32.mrf.mxu0  ;;  %2747 = vmatprep.subr.bf16.mxu1 %v3824_v2  ;;  %v553_v54 = vpack.c.bf16 %v3174_v48, %v3178_v51  ;;  %2726 = vmatpush3.bf16.msra.mxu0 %v3955_v34 }
 0x16f   : > { %3191 = vtanh.f32 %v522_v53  ;;  %2699 = vmatprep.mubr.bf16.mxu1 %v552_v52  ;;  %2775 = vmatprep.subr.bf16.mxu0 %v3839_v7 }
 0x170   : > { %3193 = vtanh.f32 %v2677_v45  ;;  %2700 = vmatmul.mubr.bf16.gmra.mxu1 %v553_v54  ;;  %v3180_v55 = vpop.eup %3179 }
 0x171   : > { %2748 = vmatpush3.bf16.msra.mxu1 %v3824_v2 }
 0x172   : > { %2749 = vmatprep.subr.bf16.mxu1 %v3827_v3  ;;  %v3182_v56 = vpop.eup %3181 }
 0x174   : > { %v3184_v57 = vpop.eup %3183 }
 0x175   : > { %v3186_v58 = vpop.eup %3185  ;;  %2750 = vmatpush3.bf16.msra.mxu1 %v3827_v3  ;;  %v554_v59 = vpack.c.bf16 %v3184_v57, %v3180_v55 }
 0x176   : > { %2751 = vmatprep.subr.bf16.mxu1 %v3833_v5  ;;  %v555_v60 = vpack.c.bf16 %v3182_v56, %v3186_v58 }
 0x177   : > { %2703 = vmatprep.mubr.bf16.mxu1 %v554_v59 }
 0x178   : > { %2704 = vmatmul.mubr.bf16.gmra.mxu1 %v555_v60  ;;  %v3188_v61 = vpop.eup %3187 }
 0x179   : > { %2752 = vmatpush3.bf16.msra.mxu1 %v3833_v5 }
 0x17a   : > { %2753 = vmatprep.subr.bf16.mxu1 %v3836_v6  ;;  %v3190_v62 = vpop.eup %3189 }
 0x17c   : > { %v3192_v63 = vpop.eup %3191 }
 0x17d   : > { %v3194_v4 = vpop.eup %3193  ;;  %2754 = vmatpush3.bf16.msra.mxu1 %v3836_v6  ;;  %v556_v12 = vpack.c.bf16 %v3192_v63, %v3188_v61 }
 0x17e   : > { %2755 = vmatprep.subr.bf16.mxu1 %v3843_v9  ;;  %v557_v14 = vpack.c.bf16 %v3190_v62, %v3194_v4 }
 0x17f   : > { %2707 = vmatprep.mubr.bf16.mxu1 %v556_v12 }
 0x180   : > { %2708 = vmatmul.mubr.bf16.gmra.mxu1 %v557_v14 }
 0x181   : > { %2756 = vmatpush3.bf16.msra.mxu1 %v3843_v9  ;;  %2759 = vmatprep.mubr.bf16.mxu1 %v3131_v13 }
 0x182   : > { %2757 = vmatprep.subr.bf16.mxu1 %v3852_v11 }
 0x185   : > { %2758 = vmatpush3.bf16.msra.mxu1 %v3852_v11 }
 0x186   : > { %2807 = vmatprep.subr.bf16.mxu1 %v3890_v24 }
 0x188   : > { %2760 = vmatmul.mubr.bf16.vlgmr.msra.gmra.mxu1 %v3132_v15 }
 0x189   : > { %2763 = vmatprep.mubr.bf16.mxu1 %v3133_v16  ;;  %2808 = vmatpush3.bf16.msra.mxu1 %v3890_v24 }
 0x18a   : > { %2809 = vmatprep.subr.bf16.mxu1 %v3892_v25 }
 0x18d   : > { %2810 = vmatpush3.bf16.msra.mxu1 %v3892_v25 }
 0x18e   : > { %2811 = vmatprep.subr.bf16.mxu1 %v3897_v26 }
 0x190   : > { %2764 = vmatmul.mubr.bf16.gmra.mxu1 %v3134_v17 }
 0x191   : > { %2767 = vmatprep.mubr.bf16.mxu1 %v3135_v18  ;;  %2812 = vmatpush3.bf16.msra.mxu1 %v3897_v26 }
 0x192   : > { %2813 = vmatprep.subr.bf16.mxu1 %v3931_v30 }
 0x195   : > { %2814 = vmatpush3.bf16.msra.mxu1 %v3931_v30 }
 0x196   : > { %2815 = vmatprep.subr.bf16.mxu1 %v3937_v31 }
 0x198   : > { %2768 = vmatmul.mubr.bf16.gmra.mxu1 %v3136_v27 }
 0x199   : > { %2771 = vmatprep.mubr.bf16.mxu1 %v3137_v28  ;;  %2816 = vmatpush3.bf16.msra.mxu1 %v3937_v31 }
 0x19a   : > { %2817 = vmatprep.subr.bf16.mxu1 %v3943_v32 }
 0x19d   : > { %2818 = vmatpush3.bf16.msra.mxu1 %v3943_v32 }
 0x19e   : > { %2819 = vmatprep.subr.bf16.mxu1 %v3949_v33 }
 0x1a0   : > { %2772 = vmatmul.mubr.bf16.gmra.mxu1 %v3138_v29 }
 0x1a1   : > { %2820 = vmatpush3.bf16.msra.mxu1 %v3949_v33 }
 0x1a2   : > { %2821 = vmatprep.subr.bf16.mxu1 %v3955_v34 }
 0x1a5   : > { %2822 = vmatpush3.bf16.msra.mxu1 %v3955_v34 }
 0x1a6   : > { %2871 = vmatprep.subr.bf16.mxu1 %v3839_v7 }
 0x228   : > { %v2697_v35 = vpop.f32.mrf.mxu1 }
 0x22a   : > { %v640_v36 = vpop.f32.mrf.mxu1 }
 0x22b   : > { %3195 = vtanh.f32 %v640_v36 }
 0x22c   : > { %v2698_v37 = vpop.f32.mrf.mxu1 }
 0x22d   : > { %3197 = vtanh.f32 %v2698_v37 }
 0x22e   : > { %v643_v38 = vpop.f32.mrf.mxu1 }
 0x22f   : > { %3199 = vtanh.f32 %v643_v38 }
 0x230   : > { %3201 = vtanh.f32 %v2697_v35  ;;  %v2701_v39 = vpop.f32.mrf.mxu1 }
 0x232   : > { %v656_v40 = vpop.f32.mrf.mxu1 }
 0x233   : > { %3203 = vtanh.f32 %v656_v40 }
 0x234   : > { %v2702_v41 = vpop.f32.mrf.mxu1 }
 0x235   : > { %3205 = vtanh.f32 %v2702_v41 }
 0x236   : > { %v659_v42 = vpop.f32.mrf.mxu1 }
 0x237   : > { %3207 = vtanh.f32 %v659_v42 }
 0x238   : > { %3209 = vtanh.f32 %v2701_v39  ;;  %v2705_v43 = vpop.f32.mrf.mxu1  ;;  %v3196_v44 = vpop.eup %3195 }
 0x23a   : > { %v672_v45 = vpop.f32.mrf.mxu1  ;;  %v3198_v46 = vpop.eup %3197 }
 0x23b   : > { %3211 = vtanh.f32 %v672_v45 }
 0x23c   : > { %v3200_v47 = vpop.eup %3199  ;;  %v2706_v48 = vpop.f32.mrf.mxu1 }
 0x23d   : > { %v3202_v49 = vpop.eup %3201  ;;  %v719_v50 = vpack.c.bf16 %v3200_v47, %v3196_v44  ;;  %3213 = vtanh.f32 %v2706_v48 }
 0x23e   : > { %v675_v51 = vpop.f32.mrf.mxu1  ;;  %v720_v52 = vpack.c.bf16 %v3198_v46, %v3202_v49 }
 0x23f   : > { %3215 = vtanh.f32 %v675_v51  ;;  %2727 = vmatprep.mubr.bf16.mxu0 %v719_v50 }
 0x240   : > { %3217 = vtanh.f32 %v2705_v43  ;;  %v2709_v53 = vpop.f32.mrf.mxu1  ;;  %2728 = vmatmul.mubr.bf16.vlgmr.msra.gmra.mxu0 %v720_v52  ;;  %v3204_v54 = vpop.eup %3203 }
 0x241   : > { %2776 = vmatpush3.bf16.msra.mxu0 %v3839_v7 }
 0x242   : > { %v688_v55 = vpop.f32.mrf.mxu1  ;;  %2777 = vmatprep.subr.bf16.mxu0 %v3841_v8  ;;  %v3206_v56 = vpop.eup %3205 }
 0x243   : > { %3219 = vtanh.f32 %v688_v55 }
 0x244   : > { %v3208_v57 = vpop.eup %3207  ;;  %v2710_v58 = vpop.f32.mrf.mxu1 }
 0x245   : > { %v3210_v59 = vpop.eup %3209  ;;  %2778 = vmatpush3.bf16.msra.mxu0 %v3841_v8  ;;  %v721_v60 = vpack.c.bf16 %v3208_v57, %v3204_v54  ;;  %3221 = vtanh.f32 %v2710_v58 }
 0x246   : > { %v691_v61 = vpop.f32.mrf.mxu1  ;;  %2779 = vmatprep.subr.bf16.mxu0 %v3846_v10  ;;  %v722_v62 = vpack.c.bf16 %v3206_v56, %v3210_v59 }
 0x247   : > { %3223 = vtanh.f32 %v691_v61  ;;  %2731 = vmatprep.mubr.bf16.mxu0 %v721_v60 }
 0x248   : > { %3225 = vtanh.f32 %v2709_v53  ;;  %2732 = vmatmul.mubr.bf16.gmra.mxu0 %v722_v62  ;;  %v2761_v63 = vpop.f32.mrf.mxu1  ;;  %v3212_v4 = vpop.eup %3211 }
 0x249   : > { %2780 = vmatpush3.bf16.msra.mxu0 %v3846_v10 }
 0x24a   : > { %v987_v12 = vpop.f32.mrf.mxu1  ;;  %2781 = vmatprep.subr.bf16.mxu0 %v3869_v19  ;;  %v3214_v13 = vpop.eup %3213 }
 0x24b   : > { %3227 = vtanh.f32 %v987_v12 }
 0x24c   : > { %v3216_v14 = vpop.eup %3215  ;;  %v2762_v8 = vpop.f32.mrf.mxu1 }
 0x24d   : > { %v3218_v15 = vpop.eup %3217  ;;  %2782 = vmatpush3.bf16.msra.mxu0 %v3869_v19  ;;  %v723_v16 = vpack.c.bf16 %v3216_v14, %v3212_v4  ;;  %3229 = vtanh.f32 %v2762_v8 }
 0x24e   : > { %v990_v17 = vpop.f32.mrf.mxu1  ;;  %2783 = vmatprep.subr.bf16.mxu0 %v3873_v20  ;;  %v724_v18 = vpack.c.bf16 %v3214_v13, %v3218_v15 }
 0x24f   : > { %3231 = vtanh.f32 %v990_v17  ;;  %2735 = vmatprep.mubr.bf16.mxu0 %v723_v16  ;;  %v3150_v16 = vld [vmem:[%s3803_s13 + $0x98] sm:$0xff]   ;;  %v3153_v17 = vld [vmem:[%s3803_s13 + $0xb0] sm:$0xff]  }
 0x250   : > { %3233 = vtanh.f32 %v2761_v63  ;;  %2736 = vmatmul.mubr.bf16.gmra.mxu0 %v724_v18  ;;  %v2765_v10 = vpop.f32.mrf.mxu1  ;;  %v3220_v27 = vpop.eup %3219 }
 0x251   : > { %2784 = vmatpush3.bf16.msra.mxu0 %v3873_v20 }
 0x252   : > { %v1003_v28 = vpop.f32.mrf.mxu1  ;;  %2785 = vmatprep.subr.bf16.mxu0 %v3877_v21  ;;  %v3222_v29 = vpop.eup %3221 }
 0x253   : > { %3235 = vtanh.f32 %v1003_v28 }
 0x254   : > { %v3224_v35 = vpop.eup %3223  ;;  %v2766_v36 = vpop.f32.mrf.mxu1 }
 0x255   : > { %v3226_v37 = vpop.eup %3225  ;;  %2786 = vmatpush3.bf16.msra.mxu0 %v3877_v21  ;;  %v725_v38 = vpack.c.bf16 %v3224_v35, %v3220_v27  ;;  %3237 = vtanh.f32 %v2766_v36 }
 0x256   : > { %v1006_v39 = vpop.f32.mrf.mxu1  ;;  %2787 = vmatprep.subr.bf16.mxu0 %v3881_v22  ;;  %v726_v40 = vpack.c.bf16 %v3222_v29, %v3226_v37 }
 0x257   : > { %3239 = vtanh.f32 %v1006_v39  ;;  %2739 = vmatprep.mubr.bf16.mxu0 %v725_v38 }
 0x258   : > { %3241 = vtanh.f32 %v2765_v10  ;;  %2740 = vmatmul.mubr.bf16.gmra.mxu0 %v726_v40  ;;  %v2769_v41 = vpop.f32.mrf.mxu1  ;;  %v3228_v42 = vpop.eup %3227 }
 0x259   : > { %2788 = vmatpush3.bf16.msra.mxu0 %v3881_v22 }
 0x25a   : > { %v1019_v43 = vpop.f32.mrf.mxu1  ;;  %2789 = vmatprep.subr.bf16.mxu0 %v3885_v23  ;;  %v3230_v44 = vpop.eup %3229 }
 0x25b   : > { %3243 = vtanh.f32 %v1019_v43 }
 0x25c   : > { %v3232_v45 = vpop.eup %3231  ;;  %v2770_v46 = vpop.f32.mrf.mxu1 }
 0x25d   : > { %v3234_v47 = vpop.eup %3233  ;;  %2790 = vmatpush3.bf16.msra.mxu0 %v3885_v23  ;;  %v1066_v48 = vpack.c.bf16 %v3232_v45, %v3228_v42  ;;  %3245 = vtanh.f32 %v2770_v46 }
 0x25e   : > { %v1022_v49 = vpop.f32.mrf.mxu1  ;;  %2839 = vmatprep.subr.bf16.mxu0 %v3817_v0  ;;  %v1067_v50 = vpack.c.bf16 %v3230_v44, %v3234_v47 }
 0x25f   : > { %3247 = vtanh.f32 %v1022_v49  ;;  %2791 = vmatprep.mubr.bf16.mxu0 %v1066_v48 }
 0x260   : > { %3249 = vtanh.f32 %v2769_v41  ;;  %v2773_v51 = vpop.f32.mrf.mxu1  ;;  %2792 = vmatmul.mubr.bf16.vlgmr.msra.gmra.mxu0 %v1067_v50  ;;  %v3236_v52 = vpop.eup %3235 }
 0x261   : > { %2840 = vmatpush3.bf16.msra.mxu0 %v3817_v0 }
 0x262   : > { %v1035_v53 = vpop.f32.mrf.mxu1  ;;  %2841 = vmatprep.subr.bf16.mxu0 %v3819_v1  ;;  %v3238_v54 = vpop.eup %3237 }
 0x263   : > { %3251 = vtanh.f32 %v1035_v53 }
 0x264   : > { %v3240_v55 = vpop.eup %3239  ;;  %v2774_v56 = vpop.f32.mrf.mxu1 }
 0x265   : > { %v3242_v57 = vpop.eup %3241  ;;  %2842 = vmatpush3.bf16.msra.mxu0 %v3819_v1  ;;  %v1068_v58 = vpack.c.bf16 %v3240_v55, %v3236_v52  ;;  %3253 = vtanh.f32 %v2774_v56 }
 0x266   : > { %v1038_v59 = vpop.f32.mrf.mxu1  ;;  %2843 = vmatprep.subr.bf16.mxu0 %v3824_v2  ;;  %v1069_v60 = vpack.c.bf16 %v3238_v54, %v3242_v57 }
 0x267   : > { %3255 = vtanh.f32 %v1038_v59  ;;  %2795 = vmatprep.mubr.bf16.mxu0 %v1068_v58 }
 0x268   : > { %3257 = vtanh.f32 %v2773_v51  ;;  %2796 = vmatmul.mubr.bf16.gmra.mxu0 %v1069_v60  ;;  %v3244_v0 = vpop.eup %3243 }
 0x269   : > { %2844 = vmatpush3.bf16.msra.mxu0 %v3824_v2 }
 0x26a   : > { %2845 = vmatprep.subr.bf16.mxu0 %v3827_v3  ;;  %v3246_v61 = vpop.eup %3245 }
 0x26c   : > { %v3248_v62 = vpop.eup %3247 }
 0x26d   : > { %v3250_v63 = vpop.eup %3249  ;;  %2846 = vmatpush3.bf16.msra.mxu0 %v3827_v3  ;;  %v1070_v1 = vpack.c.bf16 %v3248_v62, %v3244_v0  ;;  %v3147_v3 = vld [vmem:[%s3803_s13 + $0x80] sm:$0xff]  }
 0x26e   : > { %2847 = vmatprep.subr.bf16.mxu0 %v3833_v5  ;;  %v1071_v4 = vpack.c.bf16 %v3246_v61, %v3250_v63  ;;  %v4038_v61 = vld [vmem:[#allocation7 + $0x38] sm:$0xff]  }
 0x26f   : > { %2799 = vmatprep.mubr.bf16.mxu0 %v1070_v1  ;;  %v4041_v1 = vld [vmem:[#allocation7 + $0x30] sm:$0xff]  }
 0x270   : > { %2800 = vmatmul.mubr.bf16.gmra.mxu0 %v1071_v4  ;;  %v3252_v12 = vpop.eup %3251 }
 0x271   : > { %2848 = vmatpush3.bf16.msra.mxu0 %v3833_v5  ;;  %v3148_v5 = vld [vmem:[%s3803_s13 + $0x88] sm:$0xff]  }
 0x272   : > { %2849 = vmatprep.subr.bf16.mxu0 %v3836_v6  ;;  %v3254_v2 = vpop.eup %3253 }
 0x274   : > { %v3256_v13 = vpop.eup %3255 }
 0x275   : > { %v3258_v14 = vpop.eup %3257  ;;  %2850 = vmatpush3.bf16.msra.mxu0 %v3836_v6  ;;  %v1072_v8 = vpack.c.bf16 %v3256_v13, %v3252_v12  ;;  %v3149_v6 = vld [vmem:[%s3803_s13 + $0x90] sm:$0xff]  }
 0x276   : > { %2851 = vmatprep.subr.bf16.mxu0 %v3843_v9  ;;  %v1073_v15 = vpack.c.bf16 %v3254_v2, %v3258_v14 }
 0x277   : > { %2803 = vmatprep.mubr.bf16.mxu0 %v1072_v8 }
 0x278   : > { %2804 = vmatmul.mubr.bf16.gmra.mxu0 %v1073_v15 }
 0x279   : > { %2852 = vmatpush3.bf16.msra.mxu0 %v3843_v9  ;;  %2855 = vmatprep.mubr.bf16.mxu0 %v3147_v3  ;;  %v3151_v9 = vld [vmem:[%s3803_s13 + $0xa0] sm:$0xff]   ;;  %v4045_v3 = vld [vmem:[#allocation7 + $0x28] sm:$0xff]  }
 0x27a   : > { %2853 = vmatprep.subr.bf16.mxu0 %v3852_v11 }
 0x27d   : > { %2854 = vmatpush3.bf16.msra.mxu0 %v3852_v11  ;;  %v3152_v11 = vld [vmem:[%s3803_s13 + $0xa8] sm:$0xff]  }
 0x27e   : > { %2903 = vmatprep.subr.bf16.mxu0 %v3890_v24 }
 0x280   : > { %2856 = vmatmul.mubr.bf16.vlgmr.msra.gmra.mxu0 %v3148_v5 }
 0x281   : > { %2859 = vmatprep.mubr.bf16.mxu0 %v3149_v6  ;;  %2904 = vmatpush3.bf16.msra.mxu0 %v3890_v24  ;;  %v3154_v24 = vld [vmem:[%s3803_s13 + $0xb8] sm:$0xff]  }
 0x282   : > { %2905 = vmatprep.subr.bf16.mxu0 %v3892_v25 }
 0x285   : > { %2906 = vmatpush3.bf16.msra.mxu0 %v3892_v25 }
 0x286   : > { %2907 = vmatprep.subr.bf16.mxu0 %v3897_v26 }
 0x288   : > { %2860 = vmatmul.mubr.bf16.gmra.mxu0 %v3150_v16 }
 0x289   : > { %2863 = vmatprep.mubr.bf16.mxu0 %v3151_v9  ;;  %2908 = vmatpush3.bf16.msra.mxu0 %v3897_v26 }
 0x28a   : > { %2909 = vmatprep.subr.bf16.mxu0 %v3931_v30 }
 0x28d   : > { %2910 = vmatpush3.bf16.msra.mxu0 %v3931_v30 }
 0x28e   : > { %2911 = vmatprep.subr.bf16.mxu0 %v3937_v31 }
 0x290   : > { %2864 = vmatmul.mubr.bf16.gmra.mxu0 %v3152_v11 }
 0x291   : > { %2867 = vmatprep.mubr.bf16.mxu0 %v3153_v17  ;;  %2912 = vmatpush3.bf16.msra.mxu0 %v3937_v31 }
 0x292   : > { %2913 = vmatprep.subr.bf16.mxu0 %v3943_v32 }
 0x295   : > { %2914 = vmatpush3.bf16.msra.mxu0 %v3943_v32 }
 0x296   : > { %2915 = vmatprep.subr.bf16.mxu0 %v3949_v33 }
 0x298   : > { %2868 = vmatmul.mubr.bf16.gmra.mxu0 %v3154_v24 }
 0x299   : > { %2916 = vmatpush3.bf16.msra.mxu0 %v3949_v33 }
 0x29a   : > { %2917 = vmatprep.subr.bf16.mxu0 %v3955_v34 }
 0x29d   : > { %2918 = vmatpush3.bf16.msra.mxu0 %v3955_v34 }
 0x29e   : > { %2967 = vmatprep.subr.bf16.mxu0 %v3839_v7 }
 0x300   : > { %v2729_v25 = vpop.f32.mrf.mxu0 }
 0x301   : > { %874 = vst [vmem:[%s4020_s29 + $0x10] sm:$0xff] %v2729_v25 }
 0x302   : > { %v809_v26 = vpop.f32.mrf.mxu0 }
 0x303   : > { %872 = vst [vmem:[%s4020_s29] sm:$0xff] %v809_v26 }
 0x304   : > { %v2730_v18 = vpop.f32.mrf.mxu0 }
 0x305   : > { %875 = vst [vmem:[%s4020_s29 + $0x18] sm:$0xff] %v2730_v18 }
 0x306   : > { %v812_v7 = vpop.f32.mrf.mxu0 }
 0x307   : > { %873 = vst [vmem:[%s4020_s29 + $0x8] sm:$0xff] %v812_v7 }
 0x308   : > { %v2733_v10 = vpop.f32.mrf.mxu0 }
 0x309   : > { %878 = vst [vmem:[%s4020_s29 + $0x30] sm:$0xff] %v2733_v10 }
 0x30a   : > { %v825_v27 = vpop.f32.mrf.mxu0 }
 0x30b   : > { %876 = vst [vmem:[%s4020_s29 + $0x20] sm:$0xff] %v825_v27 }
 0x30c   : > { %v2734_v28 = vpop.f32.mrf.mxu0 }
 0x30d   : > { %879 = vst [vmem:[%s4020_s29 + $0x38] sm:$0xff] %v2734_v28 }
 0x30e   : > { %v828_v29 = vpop.f32.mrf.mxu0 }
 0x30f   : > { %877 = vst [vmem:[%s4020_s29 + $0x28] sm:$0xff] %v828_v29 }
 0x310   : > { %v2737_v35 = vpop.f32.mrf.mxu0 }
 0x311   : > { %882 = vst [vmem:[%s4020_s29 + $0x50] sm:$0xff] %v2737_v35 }
 0x312   : > { %v841_v36 = vpop.f32.mrf.mxu0 }
 0x313   : > { %880 = vst [vmem:[%s4020_s29 + $0x40] sm:$0xff] %v841_v36 }
 0x314   : > { %v2738_v37 = vpop.f32.mrf.mxu0 }
 0x315   : > { %883 = vst [vmem:[%s4020_s29 + $0x58] sm:$0xff] %v2738_v37 }
 0x316   : > { %v844_v38 = vpop.f32.mrf.mxu0 }
 0x317   : > { %881 = vst [vmem:[%s4020_s29 + $0x48] sm:$0xff] %v844_v38 }
 0x318   : > { %v2741_v39 = vpop.f32.mrf.mxu0 }
 0x319   : > { %886 = vst [vmem:[%s4020_s29 + $0x70] sm:$0xff] %v2741_v39 }
 0x31a   : > { %v857_v40 = vpop.f32.mrf.mxu0 }
 0x31b   : > { %884 = vst [vmem:[%s4020_s29 + $0x60] sm:$0xff] %v857_v40 }
 0x31c   : > { %v2742_v41 = vpop.f32.mrf.mxu0 }
 0x31d   : > { %887 = vst [vmem:[%s4020_s29 + $0x78] sm:$0xff] %v2742_v41 }
 0x31e   : > { %v860_v42 = vpop.f32.mrf.mxu0 }
 0x31f   : > { %885 = vst [vmem:[%s4020_s29 + $0x68] sm:$0xff] %v860_v42 }
 0x320   : > { %v2793_v43 = vpop.f32.mrf.mxu0 }
 0x322   : > { %v1108_v44 = vpop.f32.mrf.mxu0 }
 0x323   : > { %3259 = vtanh.f32 %v1108_v44 }
 0x324   : > { %v2794_v45 = vpop.f32.mrf.mxu0 }
 0x325   : > { %3261 = vtanh.f32 %v2794_v45 }
 0x326   : > { %v1111_v46 = vpop.f32.mrf.mxu0 }
 0x327   : > { %3263 = vtanh.f32 %v1111_v46  ;;  %v3422_v46 = vld [vmem:[#allocation5 + $0x38] sm:$0xff]  }
 0x328   : > { %3265 = vtanh.f32 %v2793_v43  ;;  %v2797_v47 = vpop.f32.mrf.mxu0 }
 0x32a   : > { %v1124_v48 = vpop.f32.mrf.mxu0 }
 0x32b   : > { %3267 = vtanh.f32 %v1124_v48 }
 0x32c   : > { %v2798_v49 = vpop.f32.mrf.mxu0 }
 0x32d   : > { %3269 = vtanh.f32 %v2798_v49 }
 0x32e   : > { %v1127_v50 = vpop.f32.mrf.mxu0 }
 0x32f   : > { %3271 = vtanh.f32 %v1127_v50  ;;  %v3423_v50 = vld [vmem:[#allocation5 + $0x30] sm:$0xff]  }
 0x330   : > { %3273 = vtanh.f32 %v2797_v47  ;;  %v2801_v51 = vpop.f32.mrf.mxu0  ;;  %v3260_v52 = vpop.eup %3259 }
 0x332   : > { %v1140_v53 = vpop.f32.mrf.mxu0  ;;  %v3262_v54 = vpop.eup %3261 }
 0x333   : > { %3275 = vtanh.f32 %v1140_v53 }
 0x334   : > { %v3264_v55 = vpop.eup %3263  ;;  %v2802_v56 = vpop.f32.mrf.mxu0 }
 0x335   : > { %v3266_v57 = vpop.eup %3265  ;;  %v1187_v58 = vpack.c.bf16 %v3264_v55, %v3260_v52  ;;  %3277 = vtanh.f32 %v2802_v56  ;;  %v3424_v56 = vld [vmem:[#allocation5 + $0x28] sm:$0xff]  }
 0x336   : > { %v1143_v59 = vpop.f32.mrf.mxu0  ;;  %v1188_v60 = vpack.c.bf16 %v3262_v54, %v3266_v57 }
 0x337   : > { %3279 = vtanh.f32 %v1143_v59  ;;  %2823 = vmatprep.mubr.bf16.mxu1 %v1187_v58  ;;  %v3425_v59 = vld [vmem:[#allocation5 + $0x20] sm:$0xff]  }
 0x338   : > { %3281 = vtanh.f32 %v2801_v51  ;;  %v2805_v0 = vpop.f32.mrf.mxu0  ;;  %2824 = vmatmul.mubr.bf16.vlgmr.msra.gmra.mxu1 %v1188_v60  ;;  %v3268_v62 = vpop.eup %3267 }
 0x339   : > { %2872 = vmatpush3.bf16.msra.mxu1 %v4038_v61 }
 0x33a   : > { %v1156_v63 = vpop.f32.mrf.mxu0  ;;  %2873 = vmatprep.subr.bf16.mxu1 %v4041_v1  ;;  %v3270_v4 = vpop.eup %3269 }
 0x33b   : > { %3283 = vtanh.f32 %v1156_v63 }
 0x33c   : > { %v3272_v12 = vpop.eup %3271  ;;  %v2806_v2 = vpop.f32.mrf.mxu0 }
 0x33d   : > { %v3274_v13 = vpop.eup %3273  ;;  %2874 = vmatpush3.bf16.msra.mxu1 %v4041_v1  ;;  %v1189_v14 = vpack.c.bf16 %v3272_v12, %v3268_v62  ;;  %3285 = vtanh.f32 %v2806_v2 }
 0x33e   : > { %v1159_v8 = vpop.f32.mrf.mxu0  ;;  %2875 = vmatprep.subr.bf16.mxu1 %v4045_v3  ;;  %v1190_v15 = vpack.c.bf16 %v3270_v4, %v3274_v13  ;;  %v3426_v4 = vld [vmem:[#allocation5 + $0x18] sm:$0xff]   ;;  %v3427_v13 = vld [vmem:[#allocation5 + $0x10] sm:$0xff]  }
 0x33f   : > { %3287 = vtanh.f32 %v1159_v8  ;;  %2827 = vmatprep.mubr.bf16.mxu1 %v1189_v14 }
 0x340   : > { %3289 = vtanh.f32 %v2805_v0  ;;  %2828 = vmatmul.mubr.bf16.gmra.mxu1 %v1190_v15  ;;  %v2857_v5 = vpop.f32.mrf.mxu0  ;;  %v3276_v6 = vpop.eup %3275 }
 0x341   : > { %2876 = vmatpush3.bf16.msra.mxu1 %v4045_v3 }
 0x342   : > { %v1408_v16 = vpop.f32.mrf.mxu0  ;;  %2877 = vmatprep.subr.bf16.mxu1 %v3869_v19  ;;  %v3278_v9 = vpop.eup %3277 }
 0x343   : > { %3291 = vtanh.f32 %v1408_v16  ;;  %v3428_v16 = vld [vmem:[#allocation5 + $0x8] sm:$0xff]  }
 0x344   : > { %v3280_v11 = vpop.eup %3279  ;;  %v2858_v17 = vpop.f32.mrf.mxu0 }
 0x345   : > { %v3282_v24 = vpop.eup %3281  ;;  %2878 = vmatpush3.bf16.msra.mxu1 %v3869_v19  ;;  %v1191_v25 = vpack.c.bf16 %v3280_v11, %v3276_v6  ;;  %3293 = vtanh.f32 %v2858_v17  ;;  %v3155_v6 = vld [vmem:[%s3803_s13 + $0xc0] sm:$0xff]   ;;  %v3156_v17 = vld [vmem:[%s3803_s13 + $0xc8] sm:$0xff]  }
 0x346   : > { %v1411_v26 = vpop.f32.mrf.mxu0  ;;  %2879 = vmatprep.subr.bf16.mxu1 %v3873_v20  ;;  %v1192_v18 = vpack.c.bf16 %v3278_v9, %v3282_v24  ;;  %v3429_v11 = vld [vmem:[#allocation5] sm:$0xff]   ;;  %v3157_v24 = vld [vmem:[%s3803_s13 + $0xd0] sm:$0xff]  }
 0x347   : > { %3295 = vtanh.f32 %v1411_v26  ;;  %2831 = vmatprep.mubr.bf16.mxu1 %v1191_v25  ;;  %v3430_v25 = vld [vmem:[#allocation8 + $0x38] sm:$0xff]   ;;  %v3431_v26 = vld [vmem:[#allocation8 + $0x30] sm:$0xff]  }
 0x348   : > { %3297 = vtanh.f32 %v2857_v5  ;;  %2832 = vmatmul.mubr.bf16.gmra.mxu1 %v1192_v18  ;;  %v2861_v7 = vpop.f32.mrf.mxu0  ;;  %v3284_v10 = vpop.eup %3283  ;;  %v3158_v18 = vld [vmem:[%s3803_s13 + $0xd8] sm:$0xff]  }
 0x349   : > { %2880 = vmatpush3.bf16.msra.mxu1 %v3873_v20 }
 0x34a   : > { %v1424_v27 = vpop.f32.mrf.mxu0  ;;  %2881 = vmatprep.subr.bf16.mxu1 %v3877_v21  ;;  %v3286_v28 = vpop.eup %3285 }
 0x34b   : > { %3299 = vtanh.f32 %v1424_v27  ;;  %v3160_v27 = vld [vmem:[%s3803_s13 + $0xe8] sm:$0xff]  }
 0x34c   : > { %v3288_v29 = vpop.eup %3287  ;;  %v2862_v19 = vpop.f32.mrf.mxu0 }
 0x34d   : > { %v3290_v35 = vpop.eup %3289  ;;  %2882 = vmatpush3.bf16.msra.mxu1 %v3877_v21  ;;  %v1193_v36 = vpack.c.bf16 %v3288_v29, %v3284_v10  ;;  %3301 = vtanh.f32 %v2862_v19  ;;  %v3432_v10 = vld [vmem:[#allocation8 + $0x28] sm:$0xff]   ;;  %v3162_v29 = vld [vmem:[%s3803_s13 + $0xf8] sm:$0xff]  }
 0x34e   : > { %v1427_v37 = vpop.f32.mrf.mxu0  ;;  %2883 = vmatprep.subr.bf16.mxu1 %v3881_v22  ;;  %v1194_v38 = vpack.c.bf16 %v3286_v28, %v3290_v35  ;;  %v3161_v28 = vld [vmem:[%s3803_s13 + $0xf0] sm:$0xff]  }
 0x34f   : > { %3303 = vtanh.f32 %v1427_v37  ;;  %2835 = vmatprep.mubr.bf16.mxu1 %v1193_v36 }
 0x350   : > { %3305 = vtanh.f32 %v2861_v7  ;;  %2836 = vmatmul.mubr.bf16.gmra.mxu1 %v1194_v38  ;;  %v2865_v20 = vpop.f32.mrf.mxu0  ;;  %v3292_v39 = vpop.eup %3291  ;;  %v3159_v7 = vld [vmem:[%s3803_s13 + $0xe0] sm:$0xff]  }
 0x351   : > { %2884 = vmatpush3.bf16.msra.mxu1 %v3881_v22 }
 0x352   : > { %v1440_v40 = vpop.f32.mrf.mxu0  ;;  %2885 = vmatprep.subr.bf16.mxu1 %v3885_v23  ;;  %v3294_v41 = vpop.eup %3293 }
 0x353   : > { %3307 = vtanh.f32 %v1440_v40 }
 0x354   : > { %v3296_v42 = vpop.eup %3295  ;;  %v2866_v21 = vpop.f32.mrf.mxu0 }
 0x355   : > { %v3298_v43 = vpop.eup %3297  ;;  %2886 = vmatpush3.bf16.msra.mxu1 %v3885_v23  ;;  %v1487_v44 = vpack.c.bf16 %v3296_v42, %v3292_v39  ;;  %3309 = vtanh.f32 %v2866_v21 }
 0x356   : > { %v1443_v45 = vpop.f32.mrf.mxu0  ;;  %2935 = vmatprep.subr.bf16.mxu1 %v3422_v46  ;;  %v1488_v47 = vpack.c.bf16 %v3294_v41, %v3298_v43 }
 0x357   : > { %3311 = vtanh.f32 %v1443_v45  ;;  %2887 = vmatprep.mubr.bf16.mxu1 %v1487_v44 }
 0x358   : > { %3313 = vtanh.f32 %v2865_v20  ;;  %v2869_v22 = vpop.f32.mrf.mxu0  ;;  %2888 = vmatmul.mubr.bf16.vlgmr.msra.gmra.mxu1 %v1488_v47  ;;  %v3300_v48 = vpop.eup %3299 }
 0x359   : > { %2936 = vmatpush3.bf16.msra.mxu1 %v3422_v46 }
 0x35a   : > { %v1456_v49 = vpop.f32.mrf.mxu0  ;;  %2937 = vmatprep.subr.bf16.mxu1 %v3423_v50  ;;  %v3302_v51 = vpop.eup %3301 }
 0x35b   : > { %3315 = vtanh.f32 %v1456_v49 }
 0x35c   : > { %v3304_v52 = vpop.eup %3303  ;;  %v2870_v53 = vpop.f32.mrf.mxu0 }
 0x35d   : > { %v3306_v23 = vpop.eup %3305  ;;  %2938 = vmatpush3.bf16.msra.mxu1 %v3423_v50  ;;  %v1489_v54 = vpack.c.bf16 %v3304_v52, %v3300_v48  ;;  %3317 = vtanh.f32 %v2870_v53 }
 0x35e   : > { %v1459_v55 = vpop.f32.mrf.mxu0  ;;  %2939 = vmatprep.subr.bf16.mxu1 %v3424_v56  ;;  %v1490_v57 = vpack.c.bf16 %v3302_v51, %v3306_v23 }
 0x35f   : > { %3319 = vtanh.f32 %v1459_v55  ;;  %2891 = vmatprep.mubr.bf16.mxu1 %v1489_v54 }
 0x360   : > { %3321 = vtanh.f32 %v2869_v22  ;;  %2892 = vmatmul.mubr.bf16.gmra.mxu1 %v1490_v57  ;;  %v3308_v58 = vpop.eup %3307 }
 0x361   : > { %2940 = vmatpush3.bf16.msra.mxu1 %v3424_v56 }
 0x362   : > { %2941 = vmatprep.subr.bf16.mxu1 %v3425_v59  ;;  %v3310_v60 = vpop.eup %3309 }
 0x364   : > { %v3312_v0 = vpop.eup %3311 }
 0x365   : > { %v3314_v62 = vpop.eup %3313  ;;  %2942 = vmatpush3.bf16.msra.mxu1 %v3425_v59  ;;  %v1491_v63 = vpack.c.bf16 %v3312_v0, %v3308_v58 }
 0x366   : > { %2943 = vmatprep.subr.bf16.mxu1 %v3426_v4  ;;  %v1492_v12 = vpack.c.bf16 %v3310_v60, %v3314_v62 }
 0x367   : > { %2895 = vmatprep.mubr.bf16.mxu1 %v1491_v63 }
 0x368   : > { %2896 = vmatmul.mubr.bf16.gmra.mxu1 %v1492_v12  ;;  %v3316_v2 = vpop.eup %3315 }
 0x369   : > { %2944 = vmatpush3.bf16.msra.mxu1 %v3426_v4 }
 0x36a   : > { %2945 = vmatprep.subr.bf16.mxu1 %v3427_v13  ;;  %v3318_v14 = vpop.eup %3317 }
 0x36c   : > { %v3320_v8 = vpop.eup %3319 }
 0x36d   : > { %v3322_v15 = vpop.eup %3321  ;;  %2946 = vmatpush3.bf16.msra.mxu1 %v3427_v13  ;;  %v1493_v5 = vpack.c.bf16 %v3320_v8, %v3316_v2 }
 0x36e   : > { %2947 = vmatprep.subr.bf16.mxu1 %v3428_v16  ;;  %v1494_v9 = vpack.c.bf16 %v3318_v14, %v3322_v15 }
 0x36f   : > { %2899 = vmatprep.mubr.bf16.mxu1 %v1493_v5  ;;  %v3433_v5 = vld [vmem:[#allocation7 + $0x20] sm:$0xff]  }
 0x370   : > { %2900 = vmatmul.mubr.bf16.gmra.mxu1 %v1494_v9 }
 0x371   : > { %2948 = vmatpush3.bf16.msra.mxu1 %v3428_v16  ;;  %2951 = vmatprep.mubr.bf16.mxu1 %v3155_v6 }
 0x372   : > { %2949 = vmatprep.subr.bf16.mxu1 %v3429_v11 }
 0x375   : > { %2950 = vmatpush3.bf16.msra.mxu1 %v3429_v11 }
 0x376   : > { %2999 = vmatprep.subr.bf16.mxu1 %v3430_v25 }
 0x378   : > { %2952 = vmatmul.mubr.bf16.vlgmr.msra.gmra.mxu1 %v3156_v17 }
 0x379   : > { %2955 = vmatprep.mubr.bf16.mxu1 %v3157_v24  ;;  %3000 = vmatpush3.bf16.msra.mxu1 %v3430_v25  ;;  %v3434_v24 = vld [vmem:[#allocation7 + $0x18] sm:$0xff]  }
 0x37a   : > { %3001 = vmatprep.subr.bf16.mxu1 %v3431_v26 }
 0x37d   : > { %3002 = vmatpush3.bf16.msra.mxu1 %v3431_v26 }
 0x37e   : > { %3003 = vmatprep.subr.bf16.mxu1 %v3432_v10 }
 0x380   : > { %2956 = vmatmul.mubr.bf16.gmra.mxu1 %v3158_v18 }
 0x381   : > { %2959 = vmatprep.mubr.bf16.mxu1 %v3159_v7  ;;  %3004 = vmatpush3.bf16.msra.mxu1 %v3432_v10  ;;  %v3435_v7 = vld [vmem:[#allocation7 + $0x10] sm:$0xff]  }
 0x382   : > { %3005 = vmatprep.subr.bf16.mxu1 %v3931_v30 }
 0x385   : > { %3006 = vmatpush3.bf16.msra.mxu1 %v3931_v30 }
 0x386   : > { %3007 = vmatprep.subr.bf16.mxu1 %v3937_v31 }
 0x388   : > { %2960 = vmatmul.mubr.bf16.gmra.mxu1 %v3160_v27 }
 0x389   : > { %2963 = vmatprep.mubr.bf16.mxu1 %v3161_v28  ;;  %3008 = vmatpush3.bf16.msra.mxu1 %v3937_v31 }
 0x38a   : > { %3009 = vmatprep.subr.bf16.mxu1 %v3943_v32 }
 0x38d   : > { %3010 = vmatpush3.bf16.msra.mxu1 %v3943_v32 }
 0x38e   : > { %3011 = vmatprep.subr.bf16.mxu1 %v3949_v33 }
 0x390   : > { %2964 = vmatmul.mubr.bf16.gmra.mxu1 %v3162_v29 }
 0x391   : > { %3012 = vmatpush3.bf16.msra.mxu1 %v3949_v33 }
 0x392   : > { %3013 = vmatprep.subr.bf16.mxu1 %v3955_v34 }
 0x395   : > { %3014 = vmatpush3.bf16.msra.mxu1 %v3955_v34 }
 0x3f8   : > { %v2825_v30 = vpop.f32.mrf.mxu1 }
 0x3f9   : > { %2350 = vst [vmem:[%s4020_s29 + $0x90] sm:$0xff] %v2825_v30 }
 0x3fa   : > { %v1229_v31 = vpop.f32.mrf.mxu1 }
 0x3fb   : > { %2348 = vst [vmem:[%s4020_s29 + $0x80] sm:$0xff] %v1229_v31 }
 0x3fc   : > { %v2826_v19 = vpop.f32.mrf.mxu1 }
 0x3fd   : > { %2351 = vst [vmem:[%s4020_s29 + $0x98] sm:$0xff] %v2826_v19  ;;  %v3436_v19 = vld [vmem:[#allocation7 + $0x8] sm:$0xff]  }
 0x3fe   : > { %v1232_v32 = vpop.f32.mrf.mxu1 }
 0x3ff   : > { %2349 = vst [vmem:[%s4020_s29 + $0x88] sm:$0xff] %v1232_v32 }
 0x400   : > { %v2829_v35 = vpop.f32.mrf.mxu1 }
 0x401   : > { %2354 = vst [vmem:[%s4020_s29 + $0xb0] sm:$0xff] %v2829_v35 }
 0x402   : > { %v1245_v33 = vpop.f32.mrf.mxu1 }
 0x403   : > { %2352 = vst [vmem:[%s4020_s29 + $0xa0] sm:$0xff] %v1245_v33 }
 0x404   : > { %v2830_v34 = vpop.f32.mrf.mxu1 }
 0x405   : > { %2355 = vst [vmem:[%s4020_s29 + $0xb8] sm:$0xff] %v2830_v34 }
 0x406   : > { %v1248_v36 = vpop.f32.mrf.mxu1 }
 0x407   : > { %2353 = vst [vmem:[%s4020_s29 + $0xa8] sm:$0xff] %v1248_v36  ;;  %v3437_v36 = vld [vmem:[#allocation7] sm:$0xff]  }
 0x408   : > { %v2833_v37 = vpop.f32.mrf.mxu1 }
 0x409   : > { %2358 = vst [vmem:[%s4020_s29 + $0xd0] sm:$0xff] %v2833_v37 }
 0x40a   : > { %v1261_v38 = vpop.f32.mrf.mxu1 }
 0x40b   : > { %2356 = vst [vmem:[%s4020_s29 + $0xc0] sm:$0xff] %v1261_v38 }
 0x40c   : > { %v2834_v20 = vpop.f32.mrf.mxu1 }
 0x40d   : > { %2359 = vst [vmem:[%s4020_s29 + $0xd8] sm:$0xff] %v2834_v20 }
 0x40e   : > { %v1264_v39 = vpop.f32.mrf.mxu1 }
 0x40f   : > { %2357 = vst [vmem:[%s4020_s29 + $0xc8] sm:$0xff] %v1264_v39 }
 0x410   : > { %v2837_v40 = vpop.f32.mrf.mxu1 }
 0x411   : > { %2362 = vst [vmem:[%s4020_s29 + $0xf0] sm:$0xff] %v2837_v40 }
 0x412   : > { %v1277_v41 = vpop.f32.mrf.mxu1 }
 0x413   : > { %2360 = vst [vmem:[%s4020_s29 + $0xe0] sm:$0xff] %v1277_v41 }
 0x414   : > { %v2838_v42 = vpop.f32.mrf.mxu1 }
 0x415   : > { %2363 = vst [vmem:[%s4020_s29 + $0xf8] sm:$0xff] %v2838_v42 }
 0x416   : > { %v1280_v21 = vpop.f32.mrf.mxu1 }
 0x417   : > { %2361 = vst [vmem:[%s4020_s29 + $0xe8] sm:$0xff] %v1280_v21 }
 0x418   : > { %v2889_v43 = vpop.f32.mrf.mxu1 }
 0x41a   : > { %v1529_v44 = vpop.f32.mrf.mxu1 }
 0x41b   : > { %3323 = vtanh.f32 %v1529_v44 }
 0x41c   : > { %v2890_v45 = vpop.f32.mrf.mxu1 }
 0x41d   : > { %3325 = vtanh.f32 %v2890_v45 }
 0x41e   : > { %v1532_v46 = vpop.f32.mrf.mxu1 }
 0x41f   : > { %3327 = vtanh.f32 %v1532_v46 }
 0x420   : > { %3329 = vtanh.f32 %v2889_v43  ;;  %v2893_v47 = vpop.f32.mrf.mxu1 }
 0x422   : > { %v1545_v22 = vpop.f32.mrf.mxu1 }
 0x423   : > { %3331 = vtanh.f32 %v1545_v22 }
 0x424   : > { %v2894_v48 = vpop.f32.mrf.mxu1 }
 0x425   : > { %3333 = vtanh.f32 %v2894_v48 }
 0x426   : > { %v1548_v49 = vpop.f32.mrf.mxu1 }
 0x427   : > { %3335 = vtanh.f32 %v1548_v49 }
 0x428   : > { %3337 = vtanh.f32 %v2893_v47  ;;  %v2897_v50 = vpop.f32.mrf.mxu1  ;;  %v3324_v51 = vpop.eup %3323 }
 0x42a   : > { %v1561_v52 = vpop.f32.mrf.mxu1  ;;  %v3326_v53 = vpop.eup %3325 }
 0x42b   : > { %3339 = vtanh.f32 %v1561_v52 }
 0x42c   : > { %v3328_v23 = vpop.eup %3327  ;;  %v2898_v54 = vpop.f32.mrf.mxu1 }
 0x42d   : > { %v3330_v55 = vpop.eup %3329  ;;  %v1608_v56 = vpack.c.bf16 %v3328_v23, %v3324_v51  ;;  %3341 = vtanh.f32 %v2898_v54 }
 0x42e   : > { %v1564_v57 = vpop.f32.mrf.mxu1  ;;  %v1609_v58 = vpack.c.bf16 %v3326_v53, %v3330_v55 }
 0x42f   : > { %3343 = vtanh.f32 %v1564_v57  ;;  %2919 = vmatprep.mubr.bf16.mxu0 %v1608_v56 }
 0x430   : > { %3345 = vtanh.f32 %v2897_v50  ;;  %v2901_v59 = vpop.f32.mrf.mxu1  ;;  %2920 = vmatmul.mubr.bf16.vlgmr.msra.gmra.mxu0 %v1609_v58  ;;  %v3332_v60 = vpop.eup %3331 }
 0x431   : > { %2968 = vmatpush3.bf16.msra.mxu0 %v4038_v61 }
 0x432   : > { %v1577_v0 = vpop.f32.mrf.mxu1  ;;  %2969 = vmatprep.subr.bf16.mxu0 %v4041_v1  ;;  %v3334_v62 = vpop.eup %3333 }
 0x433   : > { %3347 = vtanh.f32 %v1577_v0 }
 0x434   : > { %v3336_v63 = vpop.eup %3335  ;;  %v2902_v4 = vpop.f32.mrf.mxu1 }
 0x435   : > { %v3338_v12 = vpop.eup %3337  ;;  %2970 = vmatpush3.bf16.msra.mxu0 %v4041_v1  ;;  %v1610_v2 = vpack.c.bf16 %v3336_v63, %v3332_v60  ;;  %3349 = vtanh.f32 %v2902_v4 }
 0x436   : > { %v1580_v13 = vpop.f32.mrf.mxu1  ;;  %2971 = vmatprep.subr.bf16.mxu0 %v4045_v3  ;;  %v1611_v14 = vpack.c.bf16 %v3334_v62, %v3338_v12 }
 0x437   : > { %3351 = vtanh.f32 %v1580_v13  ;;  %2923 = vmatprep.mubr.bf16.mxu0 %v1610_v2 }
 0x438   : > { %3353 = vtanh.f32 %v2901_v59  ;;  %2924 = vmatmul.mubr.bf16.gmra.mxu0 %v1611_v14  ;;  %v2953_v61 = vpop.f32.mrf.mxu1  ;;  %v3340_v8 = vpop.eup %3339 }
 0x439   : > { %2972 = vmatpush3.bf16.msra.mxu0 %v4045_v3 }
 0x43a   : > { %v1829_v15 = vpop.f32.mrf.mxu1  ;;  %2973 = vmatprep.subr.bf16.mxu0 %v3433_v5  ;;  %v3342_v6 = vpop.eup %3341 }
 0x43b   : > { %3355 = vtanh.f32 %v1829_v15 }
 0x43c   : > { %v3344_v16 = vpop.eup %3343  ;;  %v2954_v1 = vpop.f32.mrf.mxu1 }
 0x43d   : > { %v3346_v9 = vpop.eup %3345  ;;  %2974 = vmatpush3.bf16.msra.mxu0 %v3433_v5  ;;  %v1612_v11 = vpack.c.bf16 %v3344_v16, %v3340_v8  ;;  %3357 = vtanh.f32 %v2954_v1 }
 0x43e   : > { %v1832_v17 = vpop.f32.mrf.mxu1  ;;  %2975 = vmatprep.subr.bf16.mxu0 %v3434_v24  ;;  %v1613_v25 = vpack.c.bf16 %v3342_v6, %v3346_v9 }
 0x43f   : > { %3359 = vtanh.f32 %v1832_v17  ;;  %2927 = vmatprep.mubr.bf16.mxu0 %v1612_v11 }
 0x440   : > { %3361 = vtanh.f32 %v2953_v61  ;;  %2928 = vmatmul.mubr.bf16.gmra.mxu0 %v1613_v25  ;;  %v2957_v3 = vpop.f32.mrf.mxu1  ;;  %v3348_v26 = vpop.eup %3347 }
 0x441   : > { %2976 = vmatpush3.bf16.msra.mxu0 %v3434_v24 }
 0x442   : > { %v1845_v18 = vpop.f32.mrf.mxu1  ;;  %2977 = vmatprep.subr.bf16.mxu0 %v3435_v7  ;;  %v3350_v10 = vpop.eup %3349 }
 0x443   : > { %3363 = vtanh.f32 %v1845_v18 }
 0x444   : > { %v3352_v27 = vpop.eup %3351  ;;  %v2958_v28 = vpop.f32.mrf.mxu1 }
 0x445   : > { %v3354_v29 = vpop.eup %3353  ;;  %2978 = vmatpush3.bf16.msra.mxu0 %v3435_v7  ;;  %v1614_v30 = vpack.c.bf16 %v3352_v27, %v3348_v26  ;;  %3365 = vtanh.f32 %v2958_v28 }
 0x446   : > { %v1848_v31 = vpop.f32.mrf.mxu1  ;;  %2979 = vmatprep.subr.bf16.mxu0 %v3436_v19  ;;  %v1615_v32 = vpack.c.bf16 %v3350_v10, %v3354_v29 }
 0x447   : > { %3367 = vtanh.f32 %v1848_v31  ;;  %2931 = vmatprep.mubr.bf16.mxu0 %v1614_v30 }
 0x448   : > { %3369 = vtanh.f32 %v2957_v3  ;;  %2932 = vmatmul.mubr.bf16.gmra.mxu0 %v1615_v32  ;;  %v2961_v35 = vpop.f32.mrf.mxu1  ;;  %v3356_v33 = vpop.eup %3355 }
 0x449   : > { %2980 = vmatpush3.bf16.msra.mxu0 %v3436_v19 }
 0x44a   : > { %v1861_v34 = vpop.f32.mrf.mxu1  ;;  %2981 = vmatprep.subr.bf16.mxu0 %v3437_v36  ;;  %v3358_v37 = vpop.eup %3357 }
 0x44b   : > { %3371 = vtanh.f32 %v1861_v34 }
 0x44c   : > { %v3360_v38 = vpop.eup %3359  ;;  %v2962_v20 = vpop.f32.mrf.mxu1 }
 0x44d   : > { %v3362_v39 = vpop.eup %3361  ;;  %2982 = vmatpush3.bf16.msra.mxu0 %v3437_v36  ;;  %v1908_v40 = vpack.c.bf16 %v3360_v38, %v3356_v33  ;;  %3373 = vtanh.f32 %v2962_v20 }
 0x44e   : > { %v1864_v41 = vpop.f32.mrf.mxu1  ;;  %v1909_v42 = vpack.c.bf16 %v3358_v37, %v3362_v39 }
 0x44f   : > { %3375 = vtanh.f32 %v1864_v41  ;;  %2983 = vmatprep.mubr.bf16.mxu0 %v1908_v40 }
 0x450   : > { %3377 = vtanh.f32 %v2961_v35  ;;  %v2965_v21 = vpop.f32.mrf.mxu1  ;;  %2984 = vmatmul.mubr.bf16.vlgmr.msra.gmra.mxu0 %v1909_v42  ;;  %v3364_v43 = vpop.eup %3363 }
 0x452   : > { %v1877_v44 = vpop.f32.mrf.mxu1  ;;  %v3366_v45 = vpop.eup %3365 }
 0x453   : > { %3379 = vtanh.f32 %v1877_v44 }
 0x454   : > { %v3368_v46 = vpop.eup %3367  ;;  %v2966_v47 = vpop.f32.mrf.mxu1 }
 0x455   : > { %v3370_v22 = vpop.eup %3369  ;;  %v1910_v48 = vpack.c.bf16 %v3368_v46, %v3364_v43  ;;  %3381 = vtanh.f32 %v2966_v47 }
 0x456   : > { %v1880_v49 = vpop.f32.mrf.mxu1  ;;  %v1911_v50 = vpack.c.bf16 %v3366_v45, %v3370_v22 }
 0x457   : > { %3383 = vtanh.f32 %v1880_v49  ;;  %2987 = vmatprep.mubr.bf16.mxu0 %v1910_v48 }
 0x458   : > { %3385 = vtanh.f32 %v2965_v21  ;;  %2988 = vmatmul.mubr.bf16.gmra.mxu0 %v1911_v50  ;;  %v3372_v51 = vpop.eup %3371 }
 0x45a   : > { %v3374_v52 = vpop.eup %3373 }
 0x45c   : > { %v3376_v53 = vpop.eup %3375 }
 0x45d   : > { %v3378_v23 = vpop.eup %3377  ;;  %v1912_v54 = vpack.c.bf16 %v3376_v53, %v3372_v51 }
 0x45e   : > { %v1913_v55 = vpack.c.bf16 %v3374_v52, %v3378_v23 }
 0x45f   : > { %2991 = vmatprep.mubr.bf16.mxu0 %v1912_v54 }
 0x460   : > { %2992 = vmatmul.mubr.bf16.gmra.mxu0 %v1913_v55  ;;  %v3380_v56 = vpop.eup %3379 }
 0x462   : > { %v3382_v57 = vpop.eup %3381 }
 0x464   : > { %v3384_v58 = vpop.eup %3383 }
 0x465   : > { %v3386_v59 = vpop.eup %3385  ;;  %v1914_v60 = vpack.c.bf16 %v3384_v58, %v3380_v56 }
 0x466   : > { %v1915_v0 = vpack.c.bf16 %v3382_v57, %v3386_v59 }
 0x467   : > { %2995 = vmatprep.mubr.bf16.mxu0 %v1914_v60 }
 0x468   : > { %2996 = vmatmul.mubr.bf16.gmra.mxu0 %v1915_v0 }
 0x4f0   : > { %v2921_v62 = vpop.f32.mrf.mxu0 }
 0x4f1   : > { %2390 = vst [vmem:[%s4020_s29 + $0x110] sm:$0xff] %v2921_v62 }
 0x4f2   : > { %v1650_v63 = vpop.f32.mrf.mxu0 }
 0x4f3   : > { %2388 = vst [vmem:[%s4020_s29 + $0x100] sm:$0xff] %v1650_v63 }
 0x4f4   : > { %v2922_v4 = vpop.f32.mrf.mxu0 }
 0x4f5   : > { %2391 = vst [vmem:[%s4020_s29 + $0x118] sm:$0xff] %v2922_v4 }
 0x4f6   : > { %v1653_v12 = vpop.f32.mrf.mxu0 }
 0x4f7   : > { %2389 = vst [vmem:[%s4020_s29 + $0x108] sm:$0xff] %v1653_v12 }
 0x4f8   : > { %v2925_v2 = vpop.f32.mrf.mxu0 }
 0x4f9   : > { %2394 = vst [vmem:[%s4020_s29 + $0x130] sm:$0xff] %v2925_v2 }
 0x4fa   : > { %v1666_v13 = vpop.f32.mrf.mxu0 }
 0x4fb   : > { %2392 = vst [vmem:[%s4020_s29 + $0x120] sm:$0xff] %v1666_v13 }
 0x4fc   : > { %v2926_v14 = vpop.f32.mrf.mxu0 }
 0x4fd   : > { %2395 = vst [vmem:[%s4020_s29 + $0x138] sm:$0xff] %v2926_v14 }
 0x4fe   : > { %v1669_v61 = vpop.f32.mrf.mxu0 }
 0x4ff   : > { %2393 = vst [vmem:[%s4020_s29 + $0x128] sm:$0xff] %v1669_v61 }
 0x500   : > { %v2929_v8 = vpop.f32.mrf.mxu0 }
 0x501   : > { %2398 = vst [vmem:[%s4020_s29 + $0x150] sm:$0xff] %v2929_v8 }
 0x502   : > { %v1682_v15 = vpop.f32.mrf.mxu0 }
 0x503   : > { %2396 = vst [vmem:[%s4020_s29 + $0x140] sm:$0xff] %v1682_v15 }
 0x504   : > { %v2930_v5 = vpop.f32.mrf.mxu0 }
 0x505   : > { %2399 = vst [vmem:[%s4020_s29 + $0x158] sm:$0xff] %v2930_v5 }
 0x506   : > { %v1685_v6 = vpop.f32.mrf.mxu0 }
 0x507   : > { %2397 = vst [vmem:[%s4020_s29 + $0x148] sm:$0xff] %v1685_v6 }
 0x508   : > { %v2933_v16 = vpop.f32.mrf.mxu0 }
 0x509   : > { %2402 = vst [vmem:[%s4020_s29 + $0x170] sm:$0xff] %v2933_v16 }
 0x50a   : > { %v1698_v1 = vpop.f32.mrf.mxu0 }
 0x50b   : > { %2400 = vst [vmem:[%s4020_s29 + $0x160] sm:$0xff] %v1698_v1 }
 0x50c   : > { %v2934_v9 = vpop.f32.mrf.mxu0 }
 0x50d   : > { %2403 = vst [vmem:[%s4020_s29 + $0x178] sm:$0xff] %v2934_v9 }
 0x50e   : > { %v1701_v11 = vpop.f32.mrf.mxu0 }
 0x50f   : > { %2401 = vst [vmem:[%s4020_s29 + $0x168] sm:$0xff] %v1701_v11 }
 0x510   : > { %v2985_v17 = vpop.f32.mrf.mxu0 }
 0x512   : > { %v1950_v24 = vpop.f32.mrf.mxu0 }
 0x513   : > { %3387 = vtanh.f32 %v1950_v24 }
 0x514   : > { %v2986_v25 = vpop.f32.mrf.mxu0 }
 0x515   : > { %3389 = vtanh.f32 %v2986_v25 }
 0x516   : > { %v1953_v3 = vpop.f32.mrf.mxu0 }
 0x517   : > { %3391 = vtanh.f32 %v1953_v3 }
 0x518   : > { %3393 = vtanh.f32 %v2985_v17  ;;  %v2989_v26 = vpop.f32.mrf.mxu0 }
 0x51a   : > { %v1966_v18 = vpop.f32.mrf.mxu0 }
 0x51b   : > { %3395 = vtanh.f32 %v1966_v18 }
 0x51c   : > { %v2990_v7 = vpop.f32.mrf.mxu0 }
 0x51d   : > { %3397 = vtanh.f32 %v2990_v7 }
 0x51e   : > { %v1969_v10 = vpop.f32.mrf.mxu0 }
 0x51f   : > { %3399 = vtanh.f32 %v1969_v10 }
 0x520   : > { %3401 = vtanh.f32 %v2989_v26  ;;  %v2993_v27 = vpop.f32.mrf.mxu0  ;;  %v3388_v28 = vpop.eup %3387 }
 0x522   : > { %v1982_v29 = vpop.f32.mrf.mxu0  ;;  %v3390_v30 = vpop.eup %3389 }
 0x523   : > { %3403 = vtanh.f32 %v1982_v29 }
 0x524   : > { %v3392_v31 = vpop.eup %3391  ;;  %v2994_v19 = vpop.f32.mrf.mxu0 }
 0x525   : > { %v3394_v32 = vpop.eup %3393  ;;  %v2029_v35 = vpack.c.bf16 %v3392_v31, %v3388_v28  ;;  %3405 = vtanh.f32 %v2994_v19 }
 0x526   : > { %v1985_v33 = vpop.f32.mrf.mxu0  ;;  %v2030_v34 = vpack.c.bf16 %v3390_v30, %v3394_v32 }
 0x527   : > { %3407 = vtanh.f32 %v1985_v33  ;;  %3015 = vmatprep.mubr.bf16.mxu1 %v2029_v35 }
 0x528   : > { %3409 = vtanh.f32 %v2993_v27  ;;  %v2997_v36 = vpop.f32.mrf.mxu0  ;;  %3016 = vmatmul.mubr.bf16.vlgmr.msra.gmra.mxu1 %v2030_v34  ;;  %v3396_v37 = vpop.eup %3395 }
 0x52a   : > { %v1998_v38 = vpop.f32.mrf.mxu0  ;;  %v3398_v20 = vpop.eup %3397 }
 0x52b   : > { %3411 = vtanh.f32 %v1998_v38 }
 0x52c   : > { %v3400_v39 = vpop.eup %3399  ;;  %v2998_v40 = vpop.f32.mrf.mxu0 }
 0x52d   : > { %v3402_v41 = vpop.eup %3401  ;;  %v2031_v42 = vpack.c.bf16 %v3400_v39, %v3396_v37  ;;  %3413 = vtanh.f32 %v2998_v40 }
 0x52e   : > { %v2001_v21 = vpop.f32.mrf.mxu0  ;;  %v2032_v43 = vpack.c.bf16 %v3398_v20, %v3402_v41 }
 0x52f   : > { %3415 = vtanh.f32 %v2001_v21  ;;  %3019 = vmatprep.mubr.bf16.mxu1 %v2031_v42 }
 0x530   : > { %3417 = vtanh.f32 %v2997_v36  ;;  %3020 = vmatmul.mubr.bf16.gmra.mxu1 %v2032_v43  ;;  %v3404_v44 = vpop.eup %3403 }
 0x532   : > { %v3406_v45 = vpop.eup %3405 }
 0x534   : > { %v3408_v46 = vpop.eup %3407 }
 0x535   : > { %v3410_v47 = vpop.eup %3409  ;;  %v2033_v22 = vpack.c.bf16 %v3408_v46, %v3404_v44 }
 0x536   : > { %v2034_v48 = vpack.c.bf16 %v3406_v45, %v3410_v47 }
 0x537   : > { %3023 = vmatprep.mubr.bf16.mxu1 %v2033_v22 }
 0x538   : > { %3024 = vmatmul.mubr.bf16.gmra.mxu1 %v2034_v48  ;;  %v3412_v49 = vpop.eup %3411 }
 0x53a   : > { %v3414_v50 = vpop.eup %3413 }
 0x53c   : > { %v3416_v51 = vpop.eup %3415 }
 0x53d   : > { %v3418_v52 = vpop.eup %3417  ;;  %v2035_v53 = vpack.c.bf16 %v3416_v51, %v3412_v49 }
 0x53e   : > { %v2036_v23 = vpack.c.bf16 %v3414_v50, %v3418_v52 }
 0x53f   : > { %3027 = vmatprep.mubr.bf16.mxu1 %v2035_v53 }
 0x540   : > { %3028 = vmatmul.mubr.bf16.gmra.mxu1 %v2036_v23 }
 0x5e8   : > { %v3017_v54 = vpop.f32.mrf.mxu1 }
 0x5e9   : > { %2430 = vst [vmem:[%s4020_s29 + $0x190] sm:$0xff] %v3017_v54 }
 0x5ea   : > { %v2071_v55 = vpop.f32.mrf.mxu1 }
 0x5eb   : > { %2428 = vst [vmem:[%s4020_s29 + $0x180] sm:$0xff] %v2071_v55 }
 0x5ec   : > { %v3018_v56 = vpop.f32.mrf.mxu1 }
 0x5ed   : > { %2431 = vst [vmem:[%s4020_s29 + $0x198] sm:$0xff] %v3018_v56 }
 0x5ee   : > { %v2074_v57 = vpop.f32.mrf.mxu1 }
 0x5ef   : > { %2429 = vst [vmem:[%s4020_s29 + $0x188] sm:$0xff] %v2074_v57 }
 0x5f0   : > { %v3021_v58 = vpop.f32.mrf.mxu1 }
 0x5f1   : > { %2434 = vst [vmem:[%s4020_s29 + $0x1b0] sm:$0xff] %v3021_v58 }
 0x5f2   : > { %v2087_v59 = vpop.f32.mrf.mxu1 }
 0x5f3   : > { %2432 = vst [vmem:[%s4020_s29 + $0x1a0] sm:$0xff] %v2087_v59 }
 0x5f4   : > { %v3022_v60 = vpop.f32.mrf.mxu1 }
 0x5f5   : > { %2435 = vst [vmem:[%s4020_s29 + $0x1b8] sm:$0xff] %v3022_v60 }
 0x5f6   : > { %v2090_v0 = vpop.f32.mrf.mxu1 }
 0x5f7   : > { %2433 = vst [vmem:[%s4020_s29 + $0x1a8] sm:$0xff] %v2090_v0 }
 0x5f8   : > { %v3025_v62 = vpop.f32.mrf.mxu1 }
 0x5f9   : > { %2438 = vst [vmem:[%s4020_s29 + $0x1d0] sm:$0xff] %v3025_v62 }
 0x5fa   : > { %v2103_v63 = vpop.f32.mrf.mxu1 }
 0x5fb   : > { %2436 = vst [vmem:[%s4020_s29 + $0x1c0] sm:$0xff] %v2103_v63 }
 0x5fc   : > { %v3026_v4 = vpop.f32.mrf.mxu1 }
 0x5fd   : > { %2439 = vst [vmem:[%s4020_s29 + $0x1d8] sm:$0xff] %v3026_v4 }
 0x5fe   : > { %v2106_v12 = vpop.f32.mrf.mxu1 }
 0x5ff   : > { %2437 = vst [vmem:[%s4020_s29 + $0x1c8] sm:$0xff] %v2106_v12 }
 0x600   : > { %v3029_v2 = vpop.f32.mrf.mxu1 }
 0x601   : > { %2442 = vst [vmem:[%s4020_s29 + $0x1f0] sm:$0xff] %v3029_v2 }
 0x602   : > { %v2119_v13 = vpop.f32.mrf.mxu1 }
 0x603   : > { %2440 = vst [vmem:[%s4020_s29 + $0x1e0] sm:$0xff] %v2119_v13  ;;  %2158 = sbr.rel (!%p4210_p1) target bundleno = 1571 (0x623), region = 56 }
 0x604   : > { %v3030_v14 = vpop.f32.mrf.mxu1 }
 0x605   : > { %2443 = vst [vmem:[%s4020_s29 + $0x1f8] sm:$0xff] %v3030_v14 }
 0x606   : > { %v2122_v61 = vpop.f32.mrf.mxu1 }
 0x607   : > { %2441 = vst [vmem:[%s4020_s29 + $0x1e8] sm:$0xff] %v2122_v61 }
 0x608   : > { %s4219_s30 = smov (!%p2161_p6, %s2160_s30), 64 }
 0x609   : > { %s4134_s5 = sshll.u32 %s4219_s30, 7 }
 0x60a   : > { %s2165_s14 = ssub.s32 8192, %s4134_s5 }
 0x60b   : > { %2166 = vsyncadd %s2152_s6, %s2165_s14  ;;  %p2447_p11 = scmp.ne.s32.totalorder %s4134_s5, 0  ;;  %s2454_s27 = sshll.u32 %s3673_s19, 13 }
 0x60c   : > { %s4144_s25 = scalar_lea.hbm %s4196_s4, %s2454_s27  ;;  %s2171_s22 = sshll.u32 %s4020_s29, 4  ;;  %s4147_s22 = int_to_ptr.vmem [resolvable:$true] %s2171_s22 }
 0x60d   : > { %s3542_s23 = scalar_lea.vmem %s4147_s22, %s4134_s5  ;;  %s3624_s7 = smov [#allocation10]  }
 0x60e   : > { %p3543_p3 = scmp.ne.s32.totalorder %s4147_s22, %s3542_s23  ;;  %s3546_s8 = sshll.u32 %s3624_s7, 4  ;;  %s3547_s8 = int_to_ptr.vmem [resolvable:$false] %s3546_s8 }
 0x60f   : > { %s3548_s19 = scalar_lea.vmem %s3547_s8, 16384  ;;  %p3549_p9 = scmp.lt.s32.totalorder %s4147_s22, %s3547_s8 }
 0x610   : > { %p3544_p0 = pnand %p3543_p3, %p2447_p11  ;;  %p3550_p8 = scmp.lt.s32.totalorder %s3548_s19, %s3542_s23 }
 0x612   : > { %p3545_p2 = pneg %p3544_p0  ;;  %p3551_p12 = por %p3550_p8, %p3549_p9 }
 0x614   : > { %p3552_p5 = pnand %p3551_p12, %p3545_p2 }
 0x616   : > { %3555 = shalt.err (!%p3552_p5)
}
 0x617   : > { %s3556_s12 = scalar_lea.hbm %s4144_s25, %s4134_s5  ;;  %s3560_s29 = scalar_lea.hbm %s4196_s4, 9600 }
 0x618   : > { %p3557_p13 = scmp.ne.s32.totalorder %s4144_s25, %s3556_s12  ;;  %p3561_p1 = scmp.lt.s32.totalorder %s4144_s25, %s4196_s4 }
 0x619   : > { %p3562_p6 = scmp.lt.s32.totalorder %s3560_s29, %s3556_s12 }
 0x61a   : > { %p3558_p4 = pnand %p3557_p13, %p2447_p11 }
 0x61b   : > { %p3563_p3 = por %p3562_p6, %p3561_p1 }
 0x61c   : > { %p3559_p10 = pneg %p3558_p4 }
 0x61e   : > { %p3564_p0 = pnand %p3563_p3, %p3559_p10 }
 0x620   : > { %3567 = shalt.err (!%p3564_p0)
}
 0x621   : > { %s3625_s14 = smov 128   ;;  %s3626_s27 = smov 8  }
 0x622   : > { %2177 = dma.vmem_to_hbm [thread:$0]  (%p2447_p11), %s4147_s22, %s4134_s5, %s4144_s25, %s2152_s6, %s3625_s14, %s3625_s14, %s3626_s27  }
 0x623 PF: > { %s2186_s10 = sand.u32 1, %s3602_s15   ;;  %p4211_p2 = scmp.ne.s32.totalorder %s4202_s28, 0 }
 0x624   : > { %s2187_s20 = scalar_lea.sflag [#allocation4], %s2186_s10 }
 0x625   : > { %p3056_p9 = pnand %p2278_p7, %p4211_p2 }
 0x627   : > { %p3057_p8 = pneg %p3056_p9 }
 0x629   : > { %3597 = dma.done.wait (%p3057_p8), %s2187_s20, 8192  }
 0x62a   : > { %3599 = vsyncadd (%p3057_p8), %s2187_s20, 4294959104  ;;  %p19_p12 = scmp.ge.s32.totalorder %s3677_s21, 4   ;;  %s4212_s15 = smov %s3606_s16 }
 0x62b   : > { %s4213_s16 = smov %s3610_s17  ;;  %s4214_s17 = smov %s3689_s24 }
 0x62c   : > { %s4215_s18 = smov %s3677_s21  ;;  %21 = sbr.rel (!%p19_p12) target bundleno = 7 (0x7), region = 99 }
 0x631   :  { %2192 = vsyncpa [#allocation3], 1 }
 0x632   :  { %2194 = vsyncpa [#allocation3 + $0x1], 1 }
 0x633   :  { %2195 = vsyncpa [#allocation6], 1 }
 0x634   :  { %2196 = vsyncpa [#allocation9], 1 }
 0x635   :  { %2197 = vsyncpa [#allocation4], 1 }
 0x636   :  { %2199 = vsyncpa [#allocation4 + $0x1], 1 }

</bundles_post_ra>
